<compile_context>
chip_gen: v6e
topology: v6e:2x2x1
jax: 0.10.0
libtpu: 0.0.40
codegen_flags: <defaults>
</compile_context>

<pallas_src>
import math

import jax
import jax.numpy as jnp
import numpy as np
from jax.experimental import pallas as pl
from jax.experimental.pallas import tpu as pltpu

# ----------------------------- config ---------------------------------------
B = 2          # batch
S = 8          # sequence length
D = 32         # d_model
H = 4          # attention heads
HD = D // H    # head dim
F = 64         # ffn inner dim
L = 2          # encoder layers
VOCAB = 64
EPS = 1e-5


# --------------------------- in-kernel helpers -------------------------------
def _layernorm(x, g, b):
    mu = jnp.mean(x, axis=-1, keepdims=True)
    var = jnp.mean((x - mu) ** 2, axis=-1, keepdims=True)
    return (x - mu) * jax.lax.rsqrt(var + EPS) * g + b


def _gelu(x):
    c = math.sqrt(2.0 / math.pi)
    return 0.5 * x * (1.0 + jnp.tanh(c * (x + 0.044715 * x * x * x)))


# ------------------------------ fused kernel ---------------------------------
def fused_encoder_kernel(x_ref, bias_ref, lneg_ref, lneb_ref,
                         wqkv_ref, bqkv_ref, wo_ref, bo_ref,
                         ln1g_ref, ln1b_ref, w1_ref, b1_ref,
                         w2_ref, b2_ref, ln2g_ref, ln2b_ref,
                         o_ref, qkv_buf, ctx_buf):
    """One batch element per grid step: embedding LN + L layers + mean pool.

    VMEM-resident shapes per step:
      x      : (1, S, D)  f32       bias : (1, 1, S) f32 (additive key mask)
      wqkv   : (L, D, 3D) bf16      bqkv : (L, 1, 3D) f32
      wo     : (L, D, D)  bf16      w1/w2: (L, D, F)/(L, F, D) bf16
      qkv_buf: (S, 3D) f32 scratch  ctx_buf: (S, D) f32 scratch
      out    : (1, 1, D)  f32
    """
    h = _layernorm(x_ref[0], lneg_ref[...], lneb_ref[...])        # (S, D) f32
    bias = bias_ref[0]                                            # (1, S) f32

    # L=2: static unroll keeps everything visible to the scheduler.
    # TODO(synk): at bart-large scale move this loop onto a grid axis so layer
    #   weights are double-buffered from HBM instead of VMEM-resident.
    for l in range(L):
        # ---- self-attention: ONE fused QKV matmul (bf16 in, f32 acc) ----
        qkv = jnp.dot(h.astype(jnp.bfloat16), wqkv_ref[l],
                      preferred_element_type=jnp.float32) + bqkv_ref[l]   # (S, 3D)
        qkv_buf[...] = qkv            # stage so head reads are plain window loads

        def split_heads(base):        # -> (H, S, HD), leading-axis stack only
            return jnp.stack(
                [qkv_buf[:, base + i * HD: base + (i + 1) * HD] for i in range(H)],
                axis=0)

        qh = split_heads(0)           # 1/sqrt(HD) already folded into wqkv/bqkv
        kh = split_heads(D)
        vh = split_heads(2 * D)

        s = jnp.einsum("nqd,nkd->nqk", qh, kh,
                       preferred_element_type=jnp.float32) + bias          # (H,S,S)
        m = jnp.max(s, axis=-1, keepdims=True)
        e = jnp.exp(s - m)
        p = e * pl.reciprocal(jnp.sum(e, axis=-1, keepdims=True), approx=True)
        ctx = jnp.einsum("nqk,nkd->nqd", p, vh,
                         preferred_element_type=jnp.float32)               # (H,S,HD)

        # ---- merge heads into (S, D) via staging stores, then ONE K=D matmul
        for i in range(H):
            ctx_buf[:, i * HD:(i + 1) * HD] = ctx[i]
        attn = jnp.dot(ctx_buf[...].astype(jnp.bfloat16), wo_ref[l],
                       preferred_element_type=jnp.float32) + bo_ref[l]     # (S, D)

        h1 = _layernorm(h + attn, ln1g_ref[l], ln1b_ref[l])

        # ---- feed-forward (bf16 weights, f32 accumulation) ----
        ff = _gelu(jnp.dot(h1.astype(jnp.bfloat16), w1_ref[l],
                           preferred_element_type=jnp.float32) + b1_ref[l])
        ff = jnp.dot(ff.astype(jnp.bfloat16), w2_ref[l],
                     preferred_element_type=jnp.float32) + b2_ref[l]
        h = _layernorm(h1 + ff, ln2g_ref[l], ln2b_ref[l])

    # ---- mean pooling over the (unmasked) sequence axis, matching the spec --
    o_ref[0] = (jnp.sum(h, axis=0, keepdims=True) * (1.0 / S)).astype(o_ref.dtype)


# ------------------------------ wrappers --------------------------------------
def _full_spec(shape):
    """Same full block every grid step (weights)."""
    n = len(shape)
    return pl.BlockSpec(tuple(shape), lambda b, _n=n: (0,) * _n)


def _batch_spec(shape):
    """Per-batch block along the leading axis."""
    n = len(shape)
    return pl.BlockSpec((1,) + tuple(shape[1:]),
                        lambda b, _n=n: (b,) + (0,) * (_n - 1))


def pack_params(params):
    """One-time packing: stack per-layer weights, fuse QKV, cast slabs to bf16.

    Called once at init (outside jit) so no per-step HBM shuffling is paid.
    """
    layers = params["layers"]

    def stack(name):
        return jnp.stack([ly[name] for ly in layers], axis=0)

    scale = 1.0 / math.sqrt(HD)
    wqkv = jnp.concatenate([stack("wq") * scale, stack("wk"), stack("wv")],
                           axis=-1)                                 # (L, D, 3D)
    bqkv = jnp.concatenate([stack("bq") * scale, stack("bk"), stack("bv")],
                           axis=-1)                                 # (L, 1, 3D)
    return dict(
        tok_emb=params["tok_emb"], pos_emb=params["pos_emb"],
        lne_g=params["lne_g"], lne_b=params["lne_b"],
        wqkv=wqkv.astype(jnp.bfloat16), bqkv=bqkv,
        wo=stack("wo").astype(jnp.bfloat16), bo=stack("bo"),
        ln1_g=stack("ln1_g"), ln1_b=stack("ln1_b"),
        w1=stack("w1").astype(jnp.bfloat16), b1=stack("b1"),
        w2=stack("w2").astype(jnp.bfloat16), b2=stack("b2"),
        ln2_g=stack("ln2_g"), ln2_b=stack("ln2_b"),
    )


def fused_forward_pallas(x, bias, pk):
    weights = (pk["lne_g"], pk["lne_b"], pk["wqkv"], pk["bqkv"], pk["wo"],
               pk["bo"], pk["ln1_g"], pk["ln1_b"], pk["w1"], pk["b1"],
               pk["w2"], pk["b2"], pk["ln2_g"], pk["ln2_b"])
    in_specs = ([_batch_spec(x.shape), _batch_spec(bias.shape)]
                + [_full_spec(w.shape) for w in weights])
    out = pl.pallas_call(
        fused_encoder_kernel,
        out_shape=jax.ShapeDtypeStruct((B, 1, D), jnp.float32),
        grid=(B,),
        in_specs=in_specs,
        out_specs=_batch_spec((B, 1, D)),
        scratch_shapes=[pltpu.VMEM((S, 3 * D), jnp.float32),
                        pltpu.VMEM((S, D), jnp.float32)],
        compiler_params=pltpu.CompilerParams(
            dimension_semantics=("parallel",)),
    )(x, bias, *weights)
    return out[:, 0, :]


@jax.jit
def model_forward(input_ids, attention_mask, pk):
    # --- embedding (glue: gather stays in XLA) ---
    tok = jnp.take(pk["tok_emb"], input_ids, axis=0)               # (B, S, D)
    pos = pk["pos_emb"][None, :S, :]                               # (1, S, D)
    x = (tok + pos).astype(jnp.float32)                            # (B, S, D)
    # --- hoisted attention key-bias: (B, 1, S), broadcast over heads/queries
    bias = ((1.0 - attention_mask.astype(jnp.float32)) * (-1e9))[:, None, :]
    return fused_forward_pallas(x, bias, pk)                       # (B, D)


# --------------------------- pure-JAX reference -------------------------------
def model_forward_ref(input_ids, attention_mask, params):
    tok = jnp.take(params["tok_emb"], input_ids, axis=0)
    h = tok + params["pos_emb"][None, :S, :]

    def ln(x, g, b):
        mu = jnp.mean(x, -1, keepdims=True)
        var = jnp.mean((x - mu) ** 2, -1, keepdims=True)
        return (x - mu) * jax.lax.rsqrt(var + EPS) * g + b

    h = ln(h, params["lne_g"], params["lne_b"])
    bias = (1.0 - attention_mask.astype(jnp.float32))[:, None, None, :] * (-1e9)
    for p in params["layers"]:
        q = (h @ p["wq"] + p["bq"]) / math.sqrt(HD)
        k = h @ p["wk"] + p["bk"]
        v = h @ p["wv"] + p["bv"]
        qh = q.reshape(B, S, H, HD).transpose(0, 2, 1, 3)
        kh = k.reshape(B, S, H, HD).transpose(0, 2, 1, 3)
        vh = v.reshape(B, S, H, HD).transpose(0, 2, 1, 3)
        sc = jnp.einsum("bhqd,bhkd->bhqk", qh, kh) + bias
        pr = jax.nn.softmax(sc, axis=-1)
        ctx = jnp.einsum("bhqk,bhkd->bhqd", pr, vh).transpose(0, 2, 1, 3).reshape(B, S, D)
        attn = ctx @ p["wo"] + p["bo"]
        h1 = ln(h + attn, p["ln1_g"], p["ln1_b"])
        c = math.sqrt(2.0 / math.pi)
        a = h1 @ p["w1"] + p["b1"]
        ff = (0.5 * a * (1.0 + jnp.tanh(c * (a + 0.044715 * a ** 3)))) @ p["w2"] + p["b2"]
        h = ln(h1 + ff, p["ln2_g"], p["ln2_b"])
    return jnp.sum(h, axis=1) / h.shape[1]


# ------------------------------ param init ------------------------------------
def init_params(key):
    ks = jax.random.split(key, 2 + L)
    scale = 0.02
    params = {
        "tok_emb": scale * jax.random.normal(ks[0], (VOCAB, D), jnp.float32),
        "pos_emb": scale * jax.random.normal(ks[1], (S, D), jnp.float32),
        "lne_g": jnp.ones((1, D), jnp.float32),
        "lne_b": jnp.zeros((1, D), jnp.float32),
        "layers": [],
    }
    for l in range(L):
        lk = jax.random.split(ks[2 + l], 6)
        layer = {
            "wq": scale * jax.random.normal(lk[0], (D, D), jnp.float32),
            "bq": jnp.zeros((1, D), jnp.float32),
            "wk": scale * jax.random.normal(lk[1], (D, D), jnp.float32),
            "bk": jnp.zeros((1, D), jnp.float32),
            "wv": scale * jax.random.normal(lk[2], (D, D), jnp.float32),
            "bv": jnp.zeros((1, D), jnp.float32),
            "wo": scale * jax.random.normal(lk[3], (D, D), jnp.float32),
            "bo": jnp.zeros((1, D), jnp.float32),
            "ln1_g": jnp.ones((1, D), jnp.float32),
            "ln1_b": jnp.zeros((1, D), jnp.float32),
            "w1": scale * jax.random.normal(lk[4], (D, F), jnp.float32),
            "b1": jnp.zeros((1, F), jnp.float32),
            "w2": scale * jax.random.normal(lk[5], (F, D), jnp.float32),
            "b2": jnp.zeros((1, D), jnp.float32),
            "ln2_g": jnp.ones((1, D), jnp.float32),
            "ln2_b": jnp.zeros((1, D), jnp.float32),
        }
        params["layers"].append(layer)
    return params


# --------------------------------- main ---------------------------------------
if __name__ == "__main__":
    key = jax.random.PRNGKey(0)
    pkey, ikey = jax.random.split(key)
    params = init_params(pkey)
    packed = pack_params(params)          # once, outside the jitted step

    input_ids = jax.random.randint(ikey, (B, S), 0, VOCAB, dtype=jnp.int32)
    attention_mask = jnp.ones((B, S), jnp.int32).at[1, 6:].set(0)  # 2nd seq padded

    out = model_forward(input_ids, attention_mask, packed)
    out = jax.block_until_ready(out)
    assert out.shape == (B, D), out.shape

    ref = model_forward_ref(input_ids, attention_mask, params)
    # Tolerance accounts for bf16 weight/activation casts at every matmul and
    # the approx reciprocal in softmax; a broken kernel is off by O(0.1-1).
    np.testing.assert_allclose(np.asarray(out), np.asarray(ref),
                               rtol=5e-2, atol=2e-2)

    print("KERNEL_OK")
</pallas_src>

<mosaic_0001>
module attributes {stable_mosaic.version = 11 : i64} {
  func.func @fused_encoder_kernel(%arg0: i32, %arg1: memref<1x8x32xf32, #tpu.memory_space<vmem>>, %arg2: memref<1x1x8xf32, #tpu.memory_space<vmem>>, %arg3: memref<1x32xf32, #tpu.memory_space<vmem>>, %arg4: memref<1x32xf32, #tpu.memory_space<vmem>>, %arg5: memref<2x32x96xbf16, #tpu.memory_space<vmem>>, %arg6: memref<2x1x96xf32, #tpu.memory_space<vmem>>, %arg7: memref<2x32x32xbf16, #tpu.memory_space<vmem>>, %arg8: memref<2x1x32xf32, #tpu.memory_space<vmem>>, %arg9: memref<2x1x32xf32, #tpu.memory_space<vmem>>, %arg10: memref<2x1x32xf32, #tpu.memory_space<vmem>>, %arg11: memref<2x32x64xbf16, #tpu.memory_space<vmem>>, %arg12: memref<2x1x64xf32, #tpu.memory_space<vmem>>, %arg13: memref<2x64x32xbf16, #tpu.memory_space<vmem>>, %arg14: memref<2x1x32xf32, #tpu.memory_space<vmem>>, %arg15: memref<2x1x32xf32, #tpu.memory_space<vmem>>, %arg16: memref<2x1x32xf32, #tpu.memory_space<vmem>>, %arg17: memref<1x1x32xf32, #tpu.memory_space<vmem>>, %arg18: memref<8x96xf32, #tpu.memory_space<vmem>>, %arg19: memref<8x32xf32, #tpu.memory_space<vmem>>) attributes {dimension_semantics = [#tpu.dimension_semantics<parallel>], iteration_bounds = array<i64: 2>, scalar_prefetch = 0 : i64, scratch_operands = 2 : i64, tpu.core_type = #tpu.core_type<tc>, window_params = [{transform_indices = @transform_0, window_bounds = array<i64: 1, 8, 32>}, {transform_indices = @transform_1, window_bounds = array<i64: 1, 1, 8>}, {pipeline_mode = #tpu.pipeline_mode<synchronous>, transform_indices = @transform_2, window_bounds = array<i64: 1, 32>}, {pipeline_mode = #tpu.pipeline_mode<synchronous>, transform_indices = @transform_3, window_bounds = array<i64: 1, 32>}, {pipeline_mode = #tpu.pipeline_mode<synchronous>, transform_indices = @transform_4, window_bounds = array<i64: 2, 32, 96>}, {pipeline_mode = #tpu.pipeline_mode<synchronous>, transform_indices = @transform_5, window_bounds = array<i64: 2, 1, 96>}, {pipeline_mode = #tpu.pipeline_mode<synchronous>, transform_indices = @transform_6, window_bounds = array<i64: 2, 32, 32>}, {pipeline_mode = #tpu.pipeline_mode<synchronous>, transform_indices = @transform_7, window_bounds = array<i64: 2, 1, 32>}, {pipeline_mode = #tpu.pipeline_mode<synchronous>, transform_indices = @transform_8, window_bounds = array<i64: 2, 1, 32>}, {pipeline_mode = #tpu.pipeline_mode<synchronous>, transform_indices = @transform_9, window_bounds = array<i64: 2, 1, 32>}, {pipeline_mode = #tpu.pipeline_mode<synchronous>, transform_indices = @transform_10, window_bounds = array<i64: 2, 32, 64>}, {pipeline_mode = #tpu.pipeline_mode<synchronous>, transform_indices = @transform_11, window_bounds = array<i64: 2, 1, 64>}, {pipeline_mode = #tpu.pipeline_mode<synchronous>, transform_indices = @transform_12, window_bounds = array<i64: 2, 64, 32>}, {pipeline_mode = #tpu.pipeline_mode<synchronous>, transform_indices = @transform_13, window_bounds = array<i64: 2, 1, 32>}, {pipeline_mode = #tpu.pipeline_mode<synchronous>, transform_indices = @transform_14, window_bounds = array<i64: 2, 1, 32>}, {pipeline_mode = #tpu.pipeline_mode<synchronous>, transform_indices = @transform_15, window_bounds = array<i64: 2, 1, 32>}, {transform_indices = @transform_16, window_bounds = array<i64: 1, 1, 32>}]} {
    %c0 = arith.constant 0 : index
    %c0_0 = arith.constant 0 : index
    %c0_1 = arith.constant 0 : index
    %0 = vector.load %arg1[%c0, %c0_0, %c0_1] : memref<1x8x32xf32, #tpu.memory_space<vmem>>, vector<1x8x32xf32>
    %1 = vector.shape_cast %0 : vector<1x8x32xf32> to vector<8x32xf32>
    %c0_2 = arith.constant 0 : index
    %c0_3 = arith.constant 0 : index
    %2 = vector.load %arg3[%c0_2, %c0_3] : memref<1x32xf32, #tpu.memory_space<vmem>>, vector<1x32xf32>
    %c0_4 = arith.constant 0 : index
    %c0_5 = arith.constant 0 : index
    %3 = vector.load %arg4[%c0_4, %c0_5] : memref<1x32xf32, #tpu.memory_space<vmem>>, vector<1x32xf32>
    %cst = arith.constant dense<0.000000e+00> : vector<8xf32>
    %4 = vector.multi_reduction <add>, %1, %cst [1] : vector<8x32xf32> to vector<8xf32>
    %5 = vector.shape_cast %4 : vector<8xf32> to vector<8x1xf32>
    %cst_6 = arith.constant 3.200000e+01 : f32
    %6 = vector.broadcast %cst_6 : f32 to vector<8x1xf32>
    %7 = arith.divf %5, %6 : vector<8x1xf32>
    %8 = vector.broadcast %7 : vector<8x1xf32> to vector<8x32xf32>
    %9 = arith.subf %1, %8 : vector<8x32xf32>
    %10 = arith.mulf %9, %9 : vector<8x32xf32>
    %cst_7 = arith.constant dense<0.000000e+00> : vector<8xf32>
    %11 = vector.multi_reduction <add>, %10, %cst_7 [1] : vector<8x32xf32> to vector<8xf32>
    %12 = vector.shape_cast %11 : vector<8xf32> to vector<8x1xf32>
    %cst_8 = arith.constant 3.200000e+01 : f32
    %13 = vector.broadcast %cst_8 : f32 to vector<8x1xf32>
    %14 = arith.divf %12, %13 : vector<8x1xf32>
    %15 = vector.broadcast %7 : vector<8x1xf32> to vector<8x32xf32>
    %16 = arith.subf %1, %15 : vector<8x32xf32>
    %cst_9 = arith.constant 9.99999974E-6 : f32
    %17 = vector.broadcast %cst_9 : f32 to vector<8x1xf32>
    %18 = arith.addf %14, %17 : vector<8x1xf32>
    %19 = math.rsqrt %18 : vector<8x1xf32>
    %20 = vector.broadcast %19 : vector<8x1xf32> to vector<8x32xf32>
    %21 = arith.mulf %16, %20 : vector<8x32xf32>
    %22 = vector.broadcast %2 : vector<1x32xf32> to vector<8x32xf32>
    %23 = arith.mulf %21, %22 : vector<8x32xf32>
    %24 = vector.broadcast %3 : vector<1x32xf32> to vector<8x32xf32>
    %25 = arith.addf %23, %24 : vector<8x32xf32>
    %c0_10 = arith.constant 0 : index
    %c0_11 = arith.constant 0 : index
    %c0_12 = arith.constant 0 : index
    %26 = vector.load %arg2[%c0_10, %c0_11, %c0_12] : memref<1x1x8xf32, #tpu.memory_space<vmem>>, vector<1x1x8xf32>
    %27 = vector.shape_cast %26 : vector<1x1x8xf32> to vector<1x8xf32>
    %28 = arith.truncf %25 : vector<8x32xf32> to vector<8x32xbf16>
    %c0_13 = arith.constant 0 : index
    %c0_14 = arith.constant 0 : index
    %c0_15 = arith.constant 0 : index
    %29 = vector.load %arg5[%c0_13, %c0_14, %c0_15] : memref<2x32x96xbf16, #tpu.memory_space<vmem>>, vector<1x32x96xbf16>
    %30 = vector.shape_cast %29 : vector<1x32x96xbf16> to vector<32x96xbf16>
    %cst_16 = arith.constant dense<0.000000e+00> : vector<8x96xf32>
    %31 = tpu.matmul %28, %30, %cst_16 {dimension_numbers = #tpu.dot_dimension_numbers<[1], [0], [0], [1], [0, 0, 1, 1], [], []>} : vector<8x32xbf16>, vector<32x96xbf16>, vector<8x96xf32> -> vector<8x96xf32>
    %c0_17 = arith.constant 0 : index
    %c0_18 = arith.constant 0 : index
    %c0_19 = arith.constant 0 : index
    %32 = vector.load %arg6[%c0_17, %c0_18, %c0_19] : memref<2x1x96xf32, #tpu.memory_space<vmem>>, vector<1x1x96xf32>
    %33 = vector.shape_cast %32 : vector<1x1x96xf32> to vector<1x96xf32>
    %34 = vector.broadcast %33 : vector<1x96xf32> to vector<8x96xf32>
    %35 = arith.addf %31, %34 : vector<8x96xf32>
    %c0_20 = arith.constant 0 : index
    %c0_21 = arith.constant 0 : index
    %36 = vector.load %arg18[%c0_20, %c0_21] : memref<8x96xf32, #tpu.memory_space<vmem>>, vector<8x96xf32>
    tpu.vector_store %arg18[%c0_20, %c0_21], %35 {strides = array<i32>} : memref<8x96xf32, #tpu.memory_space<vmem>>, vector<8x96xf32>,
    %c0_22 = arith.constant 0 : index
    %c0_23 = arith.constant 0 : index
    %37 = vector.load %arg18[%c0_22, %c0_23] : memref<8x96xf32, #tpu.memory_space<vmem>>, vector<8x8xf32>
    %c0_24 = arith.constant 0 : index
    %c8 = arith.constant 8 : index
    %38 = vector.load %arg18[%c0_24, %c8] : memref<8x96xf32, #tpu.memory_space<vmem>>, vector<8x8xf32>
    %c0_25 = arith.constant 0 : index
    %c16 = arith.constant 16 : index
    %39 = vector.load %arg18[%c0_25, %c16] : memref<8x96xf32, #tpu.memory_space<vmem>>, vector<8x8xf32>
    %c0_26 = arith.constant 0 : index
    %c24 = arith.constant 24 : index
    %40 = vector.load %arg18[%c0_26, %c24] : memref<8x96xf32, #tpu.memory_space<vmem>>, vector<8x8xf32>
    %41 = vector.shape_cast %37 : vector<8x8xf32> to vector<1x8x8xf32>
    %42 = vector.shape_cast %38 : vector<8x8xf32> to vector<1x8x8xf32>
    %43 = vector.shape_cast %39 : vector<8x8xf32> to vector<1x8x8xf32>
    %44 = vector.shape_cast %40 : vector<8x8xf32> to vector<1x8x8xf32>
    %45 = tpu.concatenate %41, %42, %43, %44 in 0 : vector<1x8x8xf32>, vector<1x8x8xf32>, vector<1x8x8xf32>, vector<1x8x8xf32> -> vector<4x8x8xf32>
    %c0_27 = arith.constant 0 : index
    %c32 = arith.constant 32 : index
    %46 = vector.load %arg18[%c0_27, %c32] : memref<8x96xf32, #tpu.memory_space<vmem>>, vector<8x8xf32>
    %c0_28 = arith.constant 0 : index
    %c40 = arith.constant 40 : index
    %47 = vector.load %arg18[%c0_28, %c40] : memref<8x96xf32, #tpu.memory_space<vmem>>, vector<8x8xf32>
    %c0_29 = arith.constant 0 : index
    %c48 = arith.constant 48 : index
    %48 = vector.load %arg18[%c0_29, %c48] : memref<8x96xf32, #tpu.memory_space<vmem>>, vector<8x8xf32>
    %c0_30 = arith.constant 0 : index
    %c56 = arith.constant 56 : index
    %49 = vector.load %arg18[%c0_30, %c56] : memref<8x96xf32, #tpu.memory_space<vmem>>, vector<8x8xf32>
    %50 = vector.shape_cast %46 : vector<8x8xf32> to vector<1x8x8xf32>
    %51 = vector.shape_cast %47 : vector<8x8xf32> to vector<1x8x8xf32>
    %52 = vector.shape_cast %48 : vector<8x8xf32> to vector<1x8x8xf32>
    %53 = vector.shape_cast %49 : vector<8x8xf32> to vector<1x8x8xf32>
    %54 = tpu.concatenate %50, %51, %52, %53 in 0 : vector<1x8x8xf32>, vector<1x8x8xf32>, vector<1x8x8xf32>, vector<1x8x8xf32> -> vector<4x8x8xf32>
    %c0_31 = arith.constant 0 : index
    %c64 = arith.constant 64 : index
    %55 = vector.load %arg18[%c0_31, %c64] : memref<8x96xf32, #tpu.memory_space<vmem>>, vector<8x8xf32>
    %c0_32 = arith.constant 0 : index
    %c72 = arith.constant 72 : index
    %56 = vector.load %arg18[%c0_32, %c72] : memref<8x96xf32, #tpu.memory_space<vmem>>, vector<8x8xf32>
    %c0_33 = arith.constant 0 : index
    %c80 = arith.constant 80 : index
    %57 = vector.load %arg18[%c0_33, %c80] : memref<8x96xf32, #tpu.memory_space<vmem>>, vector<8x8xf32>
    %c0_34 = arith.constant 0 : index
    %c88 = arith.constant 88 : index
    %58 = vector.load %arg18[%c0_34, %c88] : memref<8x96xf32, #tpu.memory_space<vmem>>, vector<8x8xf32>
    %59 = vector.shape_cast %55 : vector<8x8xf32> to vector<1x8x8xf32>
    %60 = vector.shape_cast %56 : vector<8x8xf32> to vector<1x8x8xf32>
    %61 = vector.shape_cast %57 : vector<8x8xf32> to vector<1x8x8xf32>
    %62 = vector.shape_cast %58 : vector<8x8xf32> to vector<1x8x8xf32>
    %63 = tpu.concatenate %59, %60, %61, %62 in 0 : vector<1x8x8xf32>, vector<1x8x8xf32>, vector<1x8x8xf32>, vector<1x8x8xf32> -> vector<4x8x8xf32>
    "tpu.trace_start"() <{level = 10 : i32, message = "nqd,nkd->nqk"}> : () -> ()
    %cst_35 = arith.constant dense<0.000000e+00> : vector<4x8x8xf32>
    %64 = tpu.matmul %45, %54, %cst_35 {dimension_numbers = #tpu.dot_dimension_numbers<[2], [2], [1], [1], [0, 0, 0, 1, 1, 1], [0], [0]>} : vector<4x8x8xf32>, vector<4x8x8xf32>, vector<4x8x8xf32> -> vector<4x8x8xf32>
    "tpu.trace_stop"() : () -> ()
    %65 = vector.shape_cast %27 : vector<1x8xf32> to vector<1x1x8xf32>
    %66 = vector.broadcast %65 : vector<1x1x8xf32> to vector<4x8x8xf32>
    %67 = arith.addf %64, %66 : vector<4x8x8xf32>
    %cst_36 = arith.constant dense<0xFF800000> : vector<4x8xf32>
    %68 = vector.multi_reduction <maximumf>, %67, %cst_36 [2] : vector<4x8x8xf32> to vector<4x8xf32>
    %69 = vector.shape_cast %68 : vector<4x8xf32> to vector<4x8x1xf32>
    %70 = vector.broadcast %69 : vector<4x8x1xf32> to vector<4x8x8xf32>
    %71 = arith.subf %67, %70 : vector<4x8x8xf32>
    %72 = math.exp %71 : vector<4x8x8xf32>
    %cst_37 = arith.constant dense<0.000000e+00> : vector<4x8xf32>
    %73 = vector.multi_reduction <add>, %72, %cst_37 [2] : vector<4x8x8xf32> to vector<4x8xf32>
    %74 = vector.shape_cast %73 : vector<4x8xf32> to vector<4x8x1xf32>
    %75 = tpu.reciprocal %74 {approx = true} : vector<4x8x1xf32> -> vector<4x8x1xf32>
    %76 = vector.broadcast %75 : vector<4x8x1xf32> to vector<4x8x8xf32>
    %77 = arith.mulf %72, %76 : vector<4x8x8xf32>
    "tpu.trace_start"() <{level = 10 : i32, message = "nqk,nkd->nqd"}> : () -> ()
    %cst_38 = arith.constant dense<0.000000e+00> : vector<4x8x8xf32>
    %78 = tpu.matmul %77, %63, %cst_38 {dimension_numbers = #tpu.dot_dimension_numbers<[2], [1], [1], [2], [0, 0, 0, 1, 1, 2], [0], [0]>} : vector<4x8x8xf32>, vector<4x8x8xf32>, vector<4x8x8xf32> -> vector<4x8x8xf32>
    "tpu.trace_stop"() : () -> ()
    %79 = vector.extract_strided_slice %78 {offsets = [0, 0, 0], sizes = [1, 8, 8], strides = [1, 1, 1]} : vector<4x8x8xf32> to vector<1x8x8xf32>
    %80 = vector.shape_cast %79 : vector<1x8x8xf32> to vector<8x8xf32>
    %c0_39 = arith.constant 0 : index
    %c0_40 = arith.constant 0 : index
    %81 = vector.load %arg19[%c0_39, %c0_40] : memref<8x32xf32, #tpu.memory_space<vmem>>, vector<8x8xf32>
    tpu.vector_store %arg19[%c0_39, %c0_40], %80 {strides = array<i32>} : memref<8x32xf32, #tpu.memory_space<vmem>>, vector<8x8xf32>,
    %82 = vector.extract_strided_slice %78 {offsets = [1, 0, 0], sizes = [1, 8, 8], strides = [1, 1, 1]} : vector<4x8x8xf32> to vector<1x8x8xf32>
    %83 = vector.shape_cast %82 : vector<1x8x8xf32> to vector<8x8xf32>
    %c0_41 = arith.constant 0 : index
    %c8_42 = arith.constant 8 : index
    %84 = vector.load %arg19[%c0_41, %c8_42] : memref<8x32xf32, #tpu.memory_space<vmem>>, vector<8x8xf32>
    tpu.vector_store %arg19[%c0_41, %c8_42], %83 {strides = array<i32>} : memref<8x32xf32, #tpu.memory_space<vmem>>, vector<8x8xf32>,
    %85 = vector.extract_strided_slice %78 {offsets = [2, 0, 0], sizes = [1, 8, 8], strides = [1, 1, 1]} : vector<4x8x8xf32> to vector<1x8x8xf32>
    %86 = vector.shape_cast %85 : vector<1x8x8xf32> to vector<8x8xf32>
    %c0_43 = arith.constant 0 : index
    %c16_44 = arith.constant 16 : index
    %87 = vector.load %arg19[%c0_43, %c16_44] : memref<8x32xf32, #tpu.memory_space<vmem>>, vector<8x8xf32>
    tpu.vector_store %arg19[%c0_43, %c16_44], %86 {strides = array<i32>} : memref<8x32xf32, #tpu.memory_space<vmem>>, vector<8x8xf32>,
    %88 = vector.extract_strided_slice %78 {offsets = [3, 0, 0], sizes = [1, 8, 8], strides = [1, 1, 1]} : vector<4x8x8xf32> to vector<1x8x8xf32>
    %89 = vector.shape_cast %88 : vector<1x8x8xf32> to vector<8x8xf32>
    %c0_45 = arith.constant 0 : index
    %c24_46 = arith.constant 24 : index
    %90 = vector.load %arg19[%c0_45, %c24_46] : memref<8x32xf32, #tpu.memory_space<vmem>>, vector<8x8xf32>
    tpu.vector_store %arg19[%c0_45, %c24_46], %89 {strides = array<i32>} : memref<8x32xf32, #tpu.memory_space<vmem>>, vector<8x8xf32>,
    %c0_47 = arith.constant 0 : index
    %c0_48 = arith.constant 0 : index
    %91 = vector.load %arg19[%c0_47, %c0_48] : memref<8x32xf32, #tpu.memory_space<vmem>>, vector<8x32xf32>
    %92 = arith.truncf %91 : vector<8x32xf32> to vector<8x32xbf16>
    %c0_49 = arith.constant 0 : index
    %c0_50 = arith.constant 0 : index
    %c0_51 = arith.constant 0 : index
    %93 = vector.load %arg7[%c0_49, %c0_50, %c0_51] : memref<2x32x32xbf16, #tpu.memory_space<vmem>>, vector<1x32x32xbf16>
    %94 = vector.shape_cast %93 : vector<1x32x32xbf16> to vector<32x32xbf16>
    %cst_52 = arith.constant dense<0.000000e+00> : vector<8x32xf32>
    %95 = tpu.matmul %92, %94, %cst_52 {dimension_numbers = #tpu.dot_dimension_numbers<[1], [0], [0], [1], [0, 0, 1, 1], [], []>} : vector<8x32xbf16>, vector<32x32xbf16>, vector<8x32xf32> -> vector<8x32xf32>
    %c0_53 = arith.constant 0 : index
    %c0_54 = arith.constant 0 : index
    %c0_55 = arith.constant 0 : index
    %96 = vector.load %arg8[%c0_53, %c0_54, %c0_55] : memref<2x1x32xf32, #tpu.memory_space<vmem>>, vector<1x1x32xf32>
    %97 = vector.shape_cast %96 : vector<1x1x32xf32> to vector<1x32xf32>
    %98 = vector.broadcast %97 : vector<1x32xf32> to vector<8x32xf32>
    %99 = arith.addf %95, %98 : vector<8x32xf32>
    %100 = arith.addf %25, %99 : vector<8x32xf32>
    %c0_56 = arith.constant 0 : index
    %c0_57 = arith.constant 0 : index
    %c0_58 = arith.constant 0 : index
    %101 = vector.load %arg9[%c0_56, %c0_57, %c0_58] : memref<2x1x32xf32, #tpu.memory_space<vmem>>, vector<1x1x32xf32>
    %102 = vector.shape_cast %101 : vector<1x1x32xf32> to vector<1x32xf32>
    %c0_59 = arith.constant 0 : index
    %c0_60 = arith.constant 0 : index
    %c0_61 = arith.constant 0 : index
    %103 = vector.load %arg10[%c0_59, %c0_60, %c0_61] : memref<2x1x32xf32, #tpu.memory_space<vmem>>, vector<1x1x32xf32>
    %104 = vector.shape_cast %103 : vector<1x1x32xf32> to vector<1x32xf32>
    %cst_62 = arith.constant dense<0.000000e+00> : vector<8xf32>
    %105 = vector.multi_reduction <add>, %100, %cst_62 [1] : vector<8x32xf32> to vector<8xf32>
    %106 = vector.shape_cast %105 : vector<8xf32> to vector<8x1xf32>
    %cst_63 = arith.constant 3.200000e+01 : f32
    %107 = vector.broadcast %cst_63 : f32 to vector<8x1xf32>
    %108 = arith.divf %106, %107 : vector<8x1xf32>
    %109 = vector.broadcast %108 : vector<8x1xf32> to vector<8x32xf32>
    %110 = arith.subf %100, %109 : vector<8x32xf32>
    %111 = arith.mulf %110, %110 : vector<8x32xf32>
    %cst_64 = arith.constant dense<0.000000e+00> : vector<8xf32>
    %112 = vector.multi_reduction <add>, %111, %cst_64 [1] : vector<8x32xf32> to vector<8xf32>
    %113 = vector.shape_cast %112 : vector<8xf32> to vector<8x1xf32>
    %cst_65 = arith.constant 3.200000e+01 : f32
    %114 = vector.broadcast %cst_65 : f32 to vector<8x1xf32>
    %115 = arith.divf %113, %114 : vector<8x1xf32>
    %116 = vector.broadcast %108 : vector<8x1xf32> to vector<8x32xf32>
    %117 = arith.subf %100, %116 : vector<8x32xf32>
    %cst_66 = arith.constant 9.99999974E-6 : f32
    %118 = vector.broadcast %cst_66 : f32 to vector<8x1xf32>
    %119 = arith.addf %115, %118 : vector<8x1xf32>
    %120 = math.rsqrt %119 : vector<8x1xf32>
    %121 = vector.broadcast %120 : vector<8x1xf32> to vector<8x32xf32>
    %122 = arith.mulf %117, %121 : vector<8x32xf32>
    %123 = vector.broadcast %102 : vector<1x32xf32> to vector<8x32xf32>
    %124 = arith.mulf %122, %123 : vector<8x32xf32>
    %125 = vector.broadcast %104 : vector<1x32xf32> to vector<8x32xf32>
    %126 = arith.addf %124, %125 : vector<8x32xf32>
    %127 = arith.truncf %126 : vector<8x32xf32> to vector<8x32xbf16>
    %c0_67 = arith.constant 0 : index
    %c0_68 = arith.constant 0 : index
    %c0_69 = arith.constant 0 : index
    %128 = vector.load %arg11[%c0_67, %c0_68, %c0_69] : memref<2x32x64xbf16, #tpu.memory_space<vmem>>, vector<1x32x64xbf16>
    %129 = vector.shape_cast %128 : vector<1x32x64xbf16> to vector<32x64xbf16>
    %cst_70 = arith.constant dense<0.000000e+00> : vector<8x64xf32>
    %130 = tpu.matmul %127, %129, %cst_70 {dimension_numbers = #tpu.dot_dimension_numbers<[1], [0], [0], [1], [0, 0, 1, 1], [], []>} : vector<8x32xbf16>, vector<32x64xbf16>, vector<8x64xf32> -> vector<8x64xf32>
    %c0_71 = arith.constant 0 : index
    %c0_72 = arith.constant 0 : index
    %c0_73 = arith.constant 0 : index
    %131 = vector.load %arg12[%c0_71, %c0_72, %c0_73] : memref<2x1x64xf32, #tpu.memory_space<vmem>>, vector<1x1x64xf32>
    %132 = vector.shape_cast %131 : vector<1x1x64xf32> to vector<1x64xf32>
    %133 = vector.broadcast %132 : vector<1x64xf32> to vector<8x64xf32>
    %134 = arith.addf %130, %133 : vector<8x64xf32>
    %cst_74 = arith.constant 5.000000e-01 : f32
    %135 = vector.broadcast %cst_74 : f32 to vector<8x64xf32>
    %136 = arith.mulf %135, %134 : vector<8x64xf32>
    %cst_75 = arith.constant 4.471500e-02 : f32
    %137 = vector.broadcast %cst_75 : f32 to vector<8x64xf32>
    %138 = arith.mulf %137, %134 : vector<8x64xf32>
    %139 = arith.mulf %138, %134 : vector<8x64xf32>
    %140 = arith.mulf %139, %134 : vector<8x64xf32>
    %141 = arith.addf %134, %140 : vector<8x64xf32>
    %cst_76 = arith.constant 0.797884583 : f32
    %142 = vector.broadcast %cst_76 : f32 to vector<8x64xf32>
    %143 = arith.mulf %142, %141 : vector<8x64xf32>
    %144 = math.tanh %143 : vector<8x64xf32>
    %cst_77 = arith.constant 1.000000e+00 : f32
    %145 = vector.broadcast %cst_77 : f32 to vector<8x64xf32>
    %146 = arith.addf %145, %144 : vector<8x64xf32>
    %147 = arith.mulf %136, %146 : vector<8x64xf32>
    %148 = arith.truncf %147 : vector<8x64xf32> to vector<8x64xbf16>
    %c0_78 = arith.constant 0 : index
    %c0_79 = arith.constant 0 : index
    %c0_80 = arith.constant 0 : index
    %149 = vector.load %arg13[%c0_78, %c0_79, %c0_80] : memref<2x64x32xbf16, #tpu.memory_space<vmem>>, vector<1x64x32xbf16>
    %150 = vector.shape_cast %149 : vector<1x64x32xbf16> to vector<64x32xbf16>
    %cst_81 = arith.constant dense<0.000000e+00> : vector<8x32xf32>
    %151 = tpu.matmul %148, %150, %cst_81 {dimension_numbers = #tpu.dot_dimension_numbers<[1], [0], [0], [1], [0, 0, 1, 1], [], []>} : vector<8x64xbf16>, vector<64x32xbf16>, vector<8x32xf32> -> vector<8x32xf32>
    %c0_82 = arith.constant 0 : index
    %c0_83 = arith.constant 0 : index
    %c0_84 = arith.constant 0 : index
    %152 = vector.load %arg14[%c0_82, %c0_83, %c0_84] : memref<2x1x32xf32, #tpu.memory_space<vmem>>, vector<1x1x32xf32>
    %153 = vector.shape_cast %152 : vector<1x1x32xf32> to vector<1x32xf32>
    %154 = vector.broadcast %153 : vector<1x32xf32> to vector<8x32xf32>
    %155 = arith.addf %151, %154 : vector<8x32xf32>
    %156 = arith.addf %126, %155 : vector<8x32xf32>
    %c0_85 = arith.constant 0 : index
    %c0_86 = arith.constant 0 : index
    %c0_87 = arith.constant 0 : index
    %157 = vector.load %arg15[%c0_85, %c0_86, %c0_87] : memref<2x1x32xf32, #tpu.memory_space<vmem>>, vector<1x1x32xf32>
    %158 = vector.shape_cast %157 : vector<1x1x32xf32> to vector<1x32xf32>
    %c0_88 = arith.constant 0 : index
    %c0_89 = arith.constant 0 : index
    %c0_90 = arith.constant 0 : index
    %159 = vector.load %arg16[%c0_88, %c0_89, %c0_90] : memref<2x1x32xf32, #tpu.memory_space<vmem>>, vector<1x1x32xf32>
    %160 = vector.shape_cast %159 : vector<1x1x32xf32> to vector<1x32xf32>
    %cst_91 = arith.constant dense<0.000000e+00> : vector<8xf32>
    %161 = vector.multi_reduction <add>, %156, %cst_91 [1] : vector<8x32xf32> to vector<8xf32>
    %162 = vector.shape_cast %161 : vector<8xf32> to vector<8x1xf32>
    %cst_92 = arith.constant 3.200000e+01 : f32
    %163 = vector.broadcast %cst_92 : f32 to vector<8x1xf32>
    %164 = arith.divf %162, %163 : vector<8x1xf32>
    %165 = vector.broadcast %164 : vector<8x1xf32> to vector<8x32xf32>
    %166 = arith.subf %156, %165 : vector<8x32xf32>
    %167 = arith.mulf %166, %166 : vector<8x32xf32>
    %cst_93 = arith.constant dense<0.000000e+00> : vector<8xf32>
    %168 = vector.multi_reduction <add>, %167, %cst_93 [1] : vector<8x32xf32> to vector<8xf32>
    %169 = vector.shape_cast %168 : vector<8xf32> to vector<8x1xf32>
    %cst_94 = arith.constant 3.200000e+01 : f32
    %170 = vector.broadcast %cst_94 : f32 to vector<8x1xf32>
    %171 = arith.divf %169, %170 : vector<8x1xf32>
    %172 = vector.broadcast %164 : vector<8x1xf32> to vector<8x32xf32>
    %173 = arith.subf %156, %172 : vector<8x32xf32>
    %cst_95 = arith.constant 9.99999974E-6 : f32
    %174 = vector.broadcast %cst_95 : f32 to vector<8x1xf32>
    %175 = arith.addf %171, %174 : vector<8x1xf32>
    %176 = math.rsqrt %175 : vector<8x1xf32>
    %177 = vector.broadcast %176 : vector<8x1xf32> to vector<8x32xf32>
    %178 = arith.mulf %173, %177 : vector<8x32xf32>
    %179 = vector.broadcast %158 : vector<1x32xf32> to vector<8x32xf32>
    %180 = arith.mulf %178, %179 : vector<8x32xf32>
    %181 = vector.broadcast %160 : vector<1x32xf32> to vector<8x32xf32>
    %182 = arith.addf %180, %181 : vector<8x32xf32>
    %183 = arith.truncf %182 : vector<8x32xf32> to vector<8x32xbf16>
    %c1 = arith.constant 1 : index
    %c0_96 = arith.constant 0 : index
    %c0_97 = arith.constant 0 : index
    %184 = vector.load %arg5[%c1, %c0_96, %c0_97] : memref<2x32x96xbf16, #tpu.memory_space<vmem>>, vector<1x32x96xbf16>
    %185 = vector.shape_cast %184 : vector<1x32x96xbf16> to vector<32x96xbf16>
    %cst_98 = arith.constant dense<0.000000e+00> : vector<8x96xf32>
    %186 = tpu.matmul %183, %185, %cst_98 {dimension_numbers = #tpu.dot_dimension_numbers<[1], [0], [0], [1], [0, 0, 1, 1], [], []>} : vector<8x32xbf16>, vector<32x96xbf16>, vector<8x96xf32> -> vector<8x96xf32>
    %c1_99 = arith.constant 1 : index
    %c0_100 = arith.constant 0 : index
    %c0_101 = arith.constant 0 : index
    %187 = vector.load %arg6[%c1_99, %c0_100, %c0_101] : memref<2x1x96xf32, #tpu.memory_space<vmem>>, vector<1x1x96xf32>
    %188 = vector.shape_cast %187 : vector<1x1x96xf32> to vector<1x96xf32>
    %189 = vector.broadcast %188 : vector<1x96xf32> to vector<8x96xf32>
    %190 = arith.addf %186, %189 : vector<8x96xf32>
    %c0_102 = arith.constant 0 : index
    %c0_103 = arith.constant 0 : index
    %191 = vector.load %arg18[%c0_102, %c0_103] : memref<8x96xf32, #tpu.memory_space<vmem>>, vector<8x96xf32>
    tpu.vector_store %arg18[%c0_102, %c0_103], %190 {strides = array<i32>} : memref<8x96xf32, #tpu.memory_space<vmem>>, vector<8x96xf32>,
    %c0_104 = arith.constant 0 : index
    %c0_105 = arith.constant 0 : index
    %192 = vector.load %arg18[%c0_104, %c0_105] : memref<8x96xf32, #tpu.memory_space<vmem>>, vector<8x8xf32>
    %c0_106 = arith.constant 0 : index
    %c8_107 = arith.constant 8 : index
    %193 = vector.load %arg18[%c0_106, %c8_107] : memref<8x96xf32, #tpu.memory_space<vmem>>, vector<8x8xf32>
    %c0_108 = arith.constant 0 : index
    %c16_109 = arith.constant 16 : index
    %194 = vector.load %arg18[%c0_108, %c16_109] : memref<8x96xf32, #tpu.memory_space<vmem>>, vector<8x8xf32>
    %c0_110 = arith.constant 0 : index
    %c24_111 = arith.constant 24 : index
    %195 = vector.load %arg18[%c0_110, %c24_111] : memref<8x96xf32, #tpu.memory_space<vmem>>, vector<8x8xf32>
    %196 = vector.shape_cast %192 : vector<8x8xf32> to vector<1x8x8xf32>
    %197 = vector.shape_cast %193 : vector<8x8xf32> to vector<1x8x8xf32>
    %198 = vector.shape_cast %194 : vector<8x8xf32> to vector<1x8x8xf32>
    %199 = vector.shape_cast %195 : vector<8x8xf32> to vector<1x8x8xf32>
    %200 = tpu.concatenate %196, %197, %198, %199 in 0 : vector<1x8x8xf32>, vector<1x8x8xf32>, vector<1x8x8xf32>, vector<1x8x8xf32> -> vector<4x8x8xf32>
    %c0_112 = arith.constant 0 : index
    %c32_113 = arith.constant 32 : index
    %201 = vector.load %arg18[%c0_112, %c32_113] : memref<8x96xf32, #tpu.memory_space<vmem>>, vector<8x8xf32>
    %c0_114 = arith.constant 0 : index
    %c40_115 = arith.constant 40 : index
    %202 = vector.load %arg18[%c0_114, %c40_115] : memref<8x96xf32, #tpu.memory_space<vmem>>, vector<8x8xf32>
    %c0_116 = arith.constant 0 : index
    %c48_117 = arith.constant 48 : index
    %203 = vector.load %arg18[%c0_116, %c48_117] : memref<8x96xf32, #tpu.memory_space<vmem>>, vector<8x8xf32>
    %c0_118 = arith.constant 0 : index
    %c56_119 = arith.constant 56 : index
    %204 = vector.load %arg18[%c0_118, %c56_119] : memref<8x96xf32, #tpu.memory_space<vmem>>, vector<8x8xf32>
    %205 = vector.shape_cast %201 : vector<8x8xf32> to vector<1x8x8xf32>
    %206 = vector.shape_cast %202 : vector<8x8xf32> to vector<1x8x8xf32>
    %207 = vector.shape_cast %203 : vector<8x8xf32> to vector<1x8x8xf32>
    %208 = vector.shape_cast %204 : vector<8x8xf32> to vector<1x8x8xf32>
    %209 = tpu.concatenate %205, %206, %207, %208 in 0 : vector<1x8x8xf32>, vector<1x8x8xf32>, vector<1x8x8xf32>, vector<1x8x8xf32> -> vector<4x8x8xf32>
    %c0_120 = arith.constant 0 : index
    %c64_121 = arith.constant 64 : index
    %210 = vector.load %arg18[%c0_120, %c64_121] : memref<8x96xf32, #tpu.memory_space<vmem>>, vector<8x8xf32>
    %c0_122 = arith.constant 0 : index
    %c72_123 = arith.constant 72 : index
    %211 = vector.load %arg18[%c0_122, %c72_123] : memref<8x96xf32, #tpu.memory_space<vmem>>, vector<8x8xf32>
    %c0_124 = arith.constant 0 : index
    %c80_125 = arith.constant 80 : index
    %212 = vector.load %arg18[%c0_124, %c80_125] : memref<8x96xf32, #tpu.memory_space<vmem>>, vector<8x8xf32>
    %c0_126 = arith.constant 0 : index
    %c88_127 = arith.constant 88 : index
    %213 = vector.load %arg18[%c0_126, %c88_127] : memref<8x96xf32, #tpu.memory_space<vmem>>, vector<8x8xf32>
    %214 = vector.shape_cast %210 : vector<8x8xf32> to vector<1x8x8xf32>
    %215 = vector.shape_cast %211 : vector<8x8xf32> to vector<1x8x8xf32>
    %216 = vector.shape_cast %212 : vector<8x8xf32> to vector<1x8x8xf32>
    %217 = vector.shape_cast %213 : vector<8x8xf32> to vector<1x8x8xf32>
    %218 = tpu.concatenate %214, %215, %216, %217 in 0 : vector<1x8x8xf32>, vector<1x8x8xf32>, vector<1x8x8xf32>, vector<1x8x8xf32> -> vector<4x8x8xf32>
    "tpu.trace_start"() <{level = 10 : i32, message = "nqd,nkd->nqk"}> : () -> ()
    %cst_128 = arith.constant dense<0.000000e+00> : vector<4x8x8xf32>
    %219 = tpu.matmul %200, %209, %cst_128 {dimension_numbers = #tpu.dot_dimension_numbers<[2], [2], [1], [1], [0, 0, 0, 1, 1, 1], [0], [0]>} : vector<4x8x8xf32>, vector<4x8x8xf32>, vector<4x8x8xf32> -> vector<4x8x8xf32>
    "tpu.trace_stop"() : () -> ()
    %220 = vector.shape_cast %27 : vector<1x8xf32> to vector<1x1x8xf32>
    %221 = vector.broadcast %220 : vector<1x1x8xf32> to vector<4x8x8xf32>
    %222 = arith.addf %219, %221 : vector<4x8x8xf32>
    %cst_129 = arith.constant dense<0xFF800000> : vector<4x8xf32>
    %223 = vector.multi_reduction <maximumf>, %222, %cst_129 [2] : vector<4x8x8xf32> to vector<4x8xf32>
    %224 = vector.shape_cast %223 : vector<4x8xf32> to vector<4x8x1xf32>
    %225 = vector.broadcast %224 : vector<4x8x1xf32> to vector<4x8x8xf32>
    %226 = arith.subf %222, %225 : vector<4x8x8xf32>
    %227 = math.exp %226 : vector<4x8x8xf32>
    %cst_130 = arith.constant dense<0.000000e+00> : vector<4x8xf32>
    %228 = vector.multi_reduction <add>, %227, %cst_130 [2] : vector<4x8x8xf32> to vector<4x8xf32>
    %229 = vector.shape_cast %228 : vector<4x8xf32> to vector<4x8x1xf32>
    %230 = tpu.reciprocal %229 {approx = true} : vector<4x8x1xf32> -> vector<4x8x1xf32>
    %231 = vector.broadcast %230 : vector<4x8x1xf32> to vector<4x8x8xf32>
    %232 = arith.mulf %227, %231 : vector<4x8x8xf32>
    "tpu.trace_start"() <{level = 10 : i32, message = "nqk,nkd->nqd"}> : () -> ()
    %cst_131 = arith.constant dense<0.000000e+00> : vector<4x8x8xf32>
    %233 = tpu.matmul %232, %218, %cst_131 {dimension_numbers = #tpu.dot_dimension_numbers<[2], [1], [1], [2], [0, 0, 0, 1, 1, 2], [0], [0]>} : vector<4x8x8xf32>, vector<4x8x8xf32>, vector<4x8x8xf32> -> vector<4x8x8xf32>
    "tpu.trace_stop"() : () -> ()
    %234 = vector.extract_strided_slice %233 {offsets = [0, 0, 0], sizes = [1, 8, 8], strides = [1, 1, 1]} : vector<4x8x8xf32> to vector<1x8x8xf32>
    %235 = vector.shape_cast %234 : vector<1x8x8xf32> to vector<8x8xf32>
    %c0_132 = arith.constant 0 : index
    %c0_133 = arith.constant 0 : index
    %236 = vector.load %arg19[%c0_132, %c0_133] : memref<8x32xf32, #tpu.memory_space<vmem>>, vector<8x8xf32>
    tpu.vector_store %arg19[%c0_132, %c0_133], %235 {strides = array<i32>} : memref<8x32xf32, #tpu.memory_space<vmem>>, vector<8x8xf32>,
    %237 = vector.extract_strided_slice %233 {offsets = [1, 0, 0], sizes = [1, 8, 8], strides = [1, 1, 1]} : vector<4x8x8xf32> to vector<1x8x8xf32>
    %238 = vector.shape_cast %237 : vector<1x8x8xf32> to vector<8x8xf32>
    %c0_134 = arith.constant 0 : index
    %c8_135 = arith.constant 8 : index
    %239 = vector.load %arg19[%c0_134, %c8_135] : memref<8x32xf32, #tpu.memory_space<vmem>>, vector<8x8xf32>
    tpu.vector_store %arg19[%c0_134, %c8_135], %238 {strides = array<i32>} : memref<8x32xf32, #tpu.memory_space<vmem>>, vector<8x8xf32>,
    %240 = vector.extract_strided_slice %233 {offsets = [2, 0, 0], sizes = [1, 8, 8], strides = [1, 1, 1]} : vector<4x8x8xf32> to vector<1x8x8xf32>
    %241 = vector.shape_cast %240 : vector<1x8x8xf32> to vector<8x8xf32>
    %c0_136 = arith.constant 0 : index
    %c16_137 = arith.constant 16 : index
    %242 = vector.load %arg19[%c0_136, %c16_137] : memref<8x32xf32, #tpu.memory_space<vmem>>, vector<8x8xf32>
    tpu.vector_store %arg19[%c0_136, %c16_137], %241 {strides = array<i32>} : memref<8x32xf32, #tpu.memory_space<vmem>>, vector<8x8xf32>,
    %243 = vector.extract_strided_slice %233 {offsets = [3, 0, 0], sizes = [1, 8, 8], strides = [1, 1, 1]} : vector<4x8x8xf32> to vector<1x8x8xf32>
    %244 = vector.shape_cast %243 : vector<1x8x8xf32> to vector<8x8xf32>
    %c0_138 = arith.constant 0 : index
    %c24_139 = arith.constant 24 : index
    %245 = vector.load %arg19[%c0_138, %c24_139] : memref<8x32xf32, #tpu.memory_space<vmem>>, vector<8x8xf32>
    tpu.vector_store %arg19[%c0_138, %c24_139], %244 {strides = array<i32>} : memref<8x32xf32, #tpu.memory_space<vmem>>, vector<8x8xf32>,
    %c0_140 = arith.constant 0 : index
    %c0_141 = arith.constant 0 : index
    %246 = vector.load %arg19[%c0_140, %c0_141] : memref<8x32xf32, #tpu.memory_space<vmem>>, vector<8x32xf32>
    %247 = arith.truncf %246 : vector<8x32xf32> to vector<8x32xbf16>
    %c1_142 = arith.constant 1 : index
    %c0_143 = arith.constant 0 : index
    %c0_144 = arith.constant 0 : index
    %248 = vector.load %arg7[%c1_142, %c0_143, %c0_144] : memref<2x32x32xbf16, #tpu.memory_space<vmem>>, vector<1x32x32xbf16>
    %249 = vector.shape_cast %248 : vector<1x32x32xbf16> to vector<32x32xbf16>
    %cst_145 = arith.constant dense<0.000000e+00> : vector<8x32xf32>
    %250 = tpu.matmul %247, %249, %cst_145 {dimension_numbers = #tpu.dot_dimension_numbers<[1], [0], [0], [1], [0, 0, 1, 1], [], []>} : vector<8x32xbf16>, vector<32x32xbf16>, vector<8x32xf32> -> vector<8x32xf32>
    %c1_146 = arith.constant 1 : index
    %c0_147 = arith.constant 0 : index
    %c0_148 = arith.constant 0 : index
    %251 = vector.load %arg8[%c1_146, %c0_147, %c0_148] : memref<2x1x32xf32, #tpu.memory_space<vmem>>, vector<1x1x32xf32>
    %252 = vector.shape_cast %251 : vector<1x1x32xf32> to vector<1x32xf32>
    %253 = vector.broadcast %252 : vector<1x32xf32> to vector<8x32xf32>
    %254 = arith.addf %250, %253 : vector<8x32xf32>
    %255 = arith.addf %182, %254 : vector<8x32xf32>
    %c1_149 = arith.constant 1 : index
    %c0_150 = arith.constant 0 : index
    %c0_151 = arith.constant 0 : index
    %256 = vector.load %arg9[%c1_149, %c0_150, %c0_151] : memref<2x1x32xf32, #tpu.memory_space<vmem>>, vector<1x1x32xf32>
    %257 = vector.shape_cast %256 : vector<1x1x32xf32> to vector<1x32xf32>
    %c1_152 = arith.constant 1 : index
    %c0_153 = arith.constant 0 : index
    %c0_154 = arith.constant 0 : index
    %258 = vector.load %arg10[%c1_152, %c0_153, %c0_154] : memref<2x1x32xf32, #tpu.memory_space<vmem>>, vector<1x1x32xf32>
    %259 = vector.shape_cast %258 : vector<1x1x32xf32> to vector<1x32xf32>
    %cst_155 = arith.constant dense<0.000000e+00> : vector<8xf32>
    %260 = vector.multi_reduction <add>, %255, %cst_155 [1] : vector<8x32xf32> to vector<8xf32>
    %261 = vector.shape_cast %260 : vector<8xf32> to vector<8x1xf32>
    %cst_156 = arith.constant 3.200000e+01 : f32
    %262 = vector.broadcast %cst_156 : f32 to vector<8x1xf32>
    %263 = arith.divf %261, %262 : vector<8x1xf32>
    %264 = vector.broadcast %263 : vector<8x1xf32> to vector<8x32xf32>
    %265 = arith.subf %255, %264 : vector<8x32xf32>
    %266 = arith.mulf %265, %265 : vector<8x32xf32>
    %cst_157 = arith.constant dense<0.000000e+00> : vector<8xf32>
    %267 = vector.multi_reduction <add>, %266, %cst_157 [1] : vector<8x32xf32> to vector<8xf32>
    %268 = vector.shape_cast %267 : vector<8xf32> to vector<8x1xf32>
    %cst_158 = arith.constant 3.200000e+01 : f32
    %269 = vector.broadcast %cst_158 : f32 to vector<8x1xf32>
    %270 = arith.divf %268, %269 : vector<8x1xf32>
    %271 = vector.broadcast %263 : vector<8x1xf32> to vector<8x32xf32>
    %272 = arith.subf %255, %271 : vector<8x32xf32>
    %cst_159 = arith.constant 9.99999974E-6 : f32
    %273 = vector.broadcast %cst_159 : f32 to vector<8x1xf32>
    %274 = arith.addf %270, %273 : vector<8x1xf32>
    %275 = math.rsqrt %274 : vector<8x1xf32>
    %276 = vector.broadcast %275 : vector<8x1xf32> to vector<8x32xf32>
    %277 = arith.mulf %272, %276 : vector<8x32xf32>
    %278 = vector.broadcast %257 : vector<1x32xf32> to vector<8x32xf32>
    %279 = arith.mulf %277, %278 : vector<8x32xf32>
    %280 = vector.broadcast %259 : vector<1x32xf32> to vector<8x32xf32>
    %281 = arith.addf %279, %280 : vector<8x32xf32>
    %282 = arith.truncf %281 : vector<8x32xf32> to vector<8x32xbf16>
    %c1_160 = arith.constant 1 : index
    %c0_161 = arith.constant 0 : index
    %c0_162 = arith.constant 0 : index
    %283 = vector.load %arg11[%c1_160, %c0_161, %c0_162] : memref<2x32x64xbf16, #tpu.memory_space<vmem>>, vector<1x32x64xbf16>
    %284 = vector.shape_cast %283 : vector<1x32x64xbf16> to vector<32x64xbf16>
    %cst_163 = arith.constant dense<0.000000e+00> : vector<8x64xf32>
    %285 = tpu.matmul %282, %284, %cst_163 {dimension_numbers = #tpu.dot_dimension_numbers<[1], [0], [0], [1], [0, 0, 1, 1], [], []>} : vector<8x32xbf16>, vector<32x64xbf16>, vector<8x64xf32> -> vector<8x64xf32>
    %c1_164 = arith.constant 1 : index
    %c0_165 = arith.constant 0 : index
    %c0_166 = arith.constant 0 : index
    %286 = vector.load %arg12[%c1_164, %c0_165, %c0_166] : memref<2x1x64xf32, #tpu.memory_space<vmem>>, vector<1x1x64xf32>
    %287 = vector.shape_cast %286 : vector<1x1x64xf32> to vector<1x64xf32>
    %288 = vector.broadcast %287 : vector<1x64xf32> to vector<8x64xf32>
    %289 = arith.addf %285, %288 : vector<8x64xf32>
    %cst_167 = arith.constant 5.000000e-01 : f32
    %290 = vector.broadcast %cst_167 : f32 to vector<8x64xf32>
    %291 = arith.mulf %290, %289 : vector<8x64xf32>
    %cst_168 = arith.constant 4.471500e-02 : f32
    %292 = vector.broadcast %cst_168 : f32 to vector<8x64xf32>
    %293 = arith.mulf %292, %289 : vector<8x64xf32>
    %294 = arith.mulf %293, %289 : vector<8x64xf32>
    %295 = arith.mulf %294, %289 : vector<8x64xf32>
    %296 = arith.addf %289, %295 : vector<8x64xf32>
    %cst_169 = arith.constant 0.797884583 : f32
    %297 = vector.broadcast %cst_169 : f32 to vector<8x64xf32>
    %298 = arith.mulf %297, %296 : vector<8x64xf32>
    %299 = math.tanh %298 : vector<8x64xf32>
    %cst_170 = arith.constant 1.000000e+00 : f32
    %300 = vector.broadcast %cst_170 : f32 to vector<8x64xf32>
    %301 = arith.addf %300, %299 : vector<8x64xf32>
    %302 = arith.mulf %291, %301 : vector<8x64xf32>
    %303 = arith.truncf %302 : vector<8x64xf32> to vector<8x64xbf16>
    %c1_171 = arith.constant 1 : index
    %c0_172 = arith.constant 0 : index
    %c0_173 = arith.constant 0 : index
    %304 = vector.load %arg13[%c1_171, %c0_172, %c0_173] : memref<2x64x32xbf16, #tpu.memory_space<vmem>>, vector<1x64x32xbf16>
    %305 = vector.shape_cast %304 : vector<1x64x32xbf16> to vector<64x32xbf16>
    %cst_174 = arith.constant dense<0.000000e+00> : vector<8x32xf32>
    %306 = tpu.matmul %303, %305, %cst_174 {dimension_numbers = #tpu.dot_dimension_numbers<[1], [0], [0], [1], [0, 0, 1, 1], [], []>} : vector<8x64xbf16>, vector<64x32xbf16>, vector<8x32xf32> -> vector<8x32xf32>
    %c1_175 = arith.constant 1 : index
    %c0_176 = arith.constant 0 : index
    %c0_177 = arith.constant 0 : index
    %307 = vector.load %arg14[%c1_175, %c0_176, %c0_177] : memref<2x1x32xf32, #tpu.memory_space<vmem>>, vector<1x1x32xf32>
    %308 = vector.shape_cast %307 : vector<1x1x32xf32> to vector<1x32xf32>
    %309 = vector.broadcast %308 : vector<1x32xf32> to vector<8x32xf32>
    %310 = arith.addf %306, %309 : vector<8x32xf32>
    %311 = arith.addf %281, %310 : vector<8x32xf32>
    %c1_178 = arith.constant 1 : index
    %c0_179 = arith.constant 0 : index
    %c0_180 = arith.constant 0 : index
    %312 = vector.load %arg15[%c1_178, %c0_179, %c0_180] : memref<2x1x32xf32, #tpu.memory_space<vmem>>, vector<1x1x32xf32>
    %313 = vector.shape_cast %312 : vector<1x1x32xf32> to vector<1x32xf32>
    %c1_181 = arith.constant 1 : index
    %c0_182 = arith.constant 0 : index
    %c0_183 = arith.constant 0 : index
    %314 = vector.load %arg16[%c1_181, %c0_182, %c0_183] : memref<2x1x32xf32, #tpu.memory_space<vmem>>, vector<1x1x32xf32>
    %315 = vector.shape_cast %314 : vector<1x1x32xf32> to vector<1x32xf32>
    %cst_184 = arith.constant dense<0.000000e+00> : vector<8xf32>
    %316 = vector.multi_reduction <add>, %311, %cst_184 [1] : vector<8x32xf32> to vector<8xf32>
    %317 = vector.shape_cast %316 : vector<8xf32> to vector<8x1xf32>
    %cst_185 = arith.constant 3.200000e+01 : f32
    %318 = vector.broadcast %cst_185 : f32 to vector<8x1xf32>
    %319 = arith.divf %317, %318 : vector<8x1xf32>
    %320 = vector.broadcast %319 : vector<8x1xf32> to vector<8x32xf32>
    %321 = arith.subf %311, %320 : vector<8x32xf32>
    %322 = arith.mulf %321, %321 : vector<8x32xf32>
    %cst_186 = arith.constant dense<0.000000e+00> : vector<8xf32>
    %323 = vector.multi_reduction <add>, %322, %cst_186 [1] : vector<8x32xf32> to vector<8xf32>
    %324 = vector.shape_cast %323 : vector<8xf32> to vector<8x1xf32>
    %cst_187 = arith.constant 3.200000e+01 : f32
    %325 = vector.broadcast %cst_187 : f32 to vector<8x1xf32>
    %326 = arith.divf %324, %325 : vector<8x1xf32>
    %327 = vector.broadcast %319 : vector<8x1xf32> to vector<8x32xf32>
    %328 = arith.subf %311, %327 : vector<8x32xf32>
    %cst_188 = arith.constant 9.99999974E-6 : f32
    %329 = vector.broadcast %cst_188 : f32 to vector<8x1xf32>
    %330 = arith.addf %326, %329 : vector<8x1xf32>
    %331 = math.rsqrt %330 : vector<8x1xf32>
    %332 = vector.broadcast %331 : vector<8x1xf32> to vector<8x32xf32>
    %333 = arith.mulf %328, %332 : vector<8x32xf32>
    %334 = vector.broadcast %313 : vector<1x32xf32> to vector<8x32xf32>
    %335 = arith.mulf %333, %334 : vector<8x32xf32>
    %336 = vector.broadcast %315 : vector<1x32xf32> to vector<8x32xf32>
    %337 = arith.addf %335, %336 : vector<8x32xf32>
    %cst_189 = arith.constant dense<0.000000e+00> : vector<32xf32>
    %338 = vector.multi_reduction <add>, %337, %cst_189 [0] : vector<8x32xf32> to vector<32xf32>
    %339 = vector.shape_cast %338 : vector<32xf32> to vector<1x32xf32>
    %cst_190 = arith.constant 1.250000e-01 : f32
    %340 = vector.broadcast %cst_190 : f32 to vector<1x32xf32>
    %341 = arith.mulf %339, %340 : vector<1x32xf32>
    %c0_191 = arith.constant 0 : index
    %c0_192 = arith.constant 0 : index
    %c0_193 = arith.constant 0 : index
    %342 = vector.load %arg17[%c0_191, %c0_192, %c0_193] : memref<1x1x32xf32, #tpu.memory_space<vmem>>, vector<1x1x32xf32>
    %343 = vector.shape_cast %342 : vector<1x1x32xf32> to vector<1x32xf32>
    %344 = vector.shape_cast %341 : vector<1x32xf32> to vector<1x1x32xf32>
    tpu.vector_store %arg17[%c0_191, %c0_192, %c0_193], %344 {strides = array<i32>} : memref<1x1x32xf32, #tpu.memory_space<vmem>>, vector<1x1x32xf32>,
    return
  }
  func.func @transform_0(%arg0: i32) -> (i32, i32, i32) {
    %c0_i32 = arith.constant 0 : i32
    %c0_i32_0 = arith.constant 0 : i32
    %c0_i32_1 = arith.constant 0 : i32
    return %arg0, %c0_i32, %c0_i32_0 : i32, i32, i32
  }
  func.func @transform_1(%arg0: i32) -> (i32, i32, i32) {
    %c0_i32 = arith.constant 0 : i32
    %c0_i32_0 = arith.constant 0 : i32
    %c0_i32_1 = arith.constant 0 : i32
    return %arg0, %c0_i32, %c0_i32_0 : i32, i32, i32
  }
  func.func @transform_2(%arg0: i32) -> (i32, i32) {
    %c0_i32 = arith.constant 0 : i32
    %c0_i32_0 = arith.constant 0 : i32
    %c0_i32_1 = arith.constant 0 : i32
    return %c0_i32, %c0_i32_0 : i32, i32
  }
  func.func @transform_3(%arg0: i32) -> (i32, i32) {
    %c0_i32 = arith.constant 0 : i32
    %c0_i32_0 = arith.constant 0 : i32
    %c0_i32_1 = arith.constant 0 : i32
    return %c0_i32, %c0_i32_0 : i32, i32
  }
  func.func @transform_4(%arg0: i32) -> (i32, i32, i32) {
    %c0_i32 = arith.constant 0 : i32
    %c0_i32_0 = arith.constant 0 : i32
    %c0_i32_1 = arith.constant 0 : i32
    %c0_i32_2 = arith.constant 0 : i32
    return %c0_i32, %c0_i32_0, %c0_i32_1 : i32, i32, i32
  }
  func.func @transform_5(%arg0: i32) -> (i32, i32, i32) {
    %c0_i32 = arith.constant 0 : i32
    %c0_i32_0 = arith.constant 0 : i32
    %c0_i32_1 = arith.constant 0 : i32
    %c0_i32_2 = arith.constant 0 : i32
    return %c0_i32, %c0_i32_0, %c0_i32_1 : i32, i32, i32
  }
  func.func @transform_6(%arg0: i32) -> (i32, i32, i32) {
    %c0_i32 = arith.constant 0 : i32
    %c0_i32_0 = arith.constant 0 : i32
    %c0_i32_1 = arith.constant 0 : i32
    %c0_i32_2 = arith.constant 0 : i32
    return %c0_i32, %c0_i32_0, %c0_i32_1 : i32, i32, i32
  }
  func.func @transform_7(%arg0: i32) -> (i32, i32, i32) {
    %c0_i32 = arith.constant 0 : i32
    %c0_i32_0 = arith.constant 0 : i32
    %c0_i32_1 = arith.constant 0 : i32
    %c0_i32_2 = arith.constant 0 : i32
    return %c0_i32, %c0_i32_0, %c0_i32_1 : i32, i32, i32
  }
  func.func @transform_8(%arg0: i32) -> (i32, i32, i32) {
    %c0_i32 = arith.constant 0 : i32
    %c0_i32_0 = arith.constant 0 : i32
    %c0_i32_1 = arith.constant 0 : i32
    %c0_i32_2 = arith.constant 0 : i32
    return %c0_i32, %c0_i32_0, %c0_i32_1 : i32, i32, i32
  }
  func.func @transform_9(%arg0: i32) -> (i32, i32, i32) {
    %c0_i32 = arith.constant 0 : i32
    %c0_i32_0 = arith.constant 0 : i32
    %c0_i32_1 = arith.constant 0 : i32
    %c0_i32_2 = arith.constant 0 : i32
    return %c0_i32, %c0_i32_0, %c0_i32_1 : i32, i32, i32
  }
  func.func @transform_10(%arg0: i32) -> (i32, i32, i32) {
    %c0_i32 = arith.constant 0 : i32
    %c0_i32_0 = arith.constant 0 : i32
    %c0_i32_1 = arith.constant 0 : i32
    %c0_i32_2 = arith.constant 0 : i32
    return %c0_i32, %c0_i32_0, %c0_i32_1 : i32, i32, i32
  }
  func.func @transform_11(%arg0: i32) -> (i32, i32, i32) {
    %c0_i32 = arith.constant 0 : i32
    %c0_i32_0 = arith.constant 0 : i32
    %c0_i32_1 = arith.constant 0 : i32
    %c0_i32_2 = arith.constant 0 : i32
    return %c0_i32, %c0_i32_0, %c0_i32_1 : i32, i32, i32
  }
  func.func @transform_12(%arg0: i32) -> (i32, i32, i32) {
    %c0_i32 = arith.constant 0 : i32
    %c0_i32_0 = arith.constant 0 : i32
    %c0_i32_1 = arith.constant 0 : i32
    %c0_i32_2 = arith.constant 0 : i32
    return %c0_i32, %c0_i32_0, %c0_i32_1 : i32, i32, i32
  }
  func.func @transform_13(%arg0: i32) -> (i32, i32, i32) {
    %c0_i32 = arith.constant 0 : i32
    %c0_i32_0 = arith.constant 0 : i32
    %c0_i32_1 = arith.constant 0 : i32
    %c0_i32_2 = arith.constant 0 : i32
    return %c0_i32, %c0_i32_0, %c0_i32_1 : i32, i32, i32
  }
  func.func @transform_14(%arg0: i32) -> (i32, i32, i32) {
    %c0_i32 = arith.constant 0 : i32
    %c0_i32_0 = arith.constant 0 : i32
    %c0_i32_1 = arith.constant 0 : i32
    %c0_i32_2 = arith.constant 0 : i32
    return %c0_i32, %c0_i32_0, %c0_i32_1 : i32, i32, i32
  }
  func.func @transform_15(%arg0: i32) -> (i32, i32, i32) {
    %c0_i32 = arith.constant 0 : i32
    %c0_i32_0 = arith.constant 0 : i32
    %c0_i32_1 = arith.constant 0 : i32
    %c0_i32_2 = arith.constant 0 : i32
    return %c0_i32, %c0_i32_0, %c0_i32_1 : i32, i32, i32
  }
  func.func @transform_16(%arg0: i32) -> (i32, i32, i32) {
    %c0_i32 = arith.constant 0 : i32
    %c0_i32_0 = arith.constant 0 : i32
    %c0_i32_1 = arith.constant 0 : i32
    return %arg0, %c0_i32, %c0_i32_0 : i32, i32, i32
  }
}

</mosaic_0001>

<bundles_post_ra>
// kernel: model_forward.1
= control target key start
LH: loop header
LB: loop body
LE: loop exit
PB: predicated region body
PF: predicated region fallthrough
CT: control target
= control target key end

     0   :  { %s3763_s0 = inlined_call_operand.vmem [shape: f32[2,8,32], index: 0, kind: input, shape index: {}]   ;;  %s3764_s1 = inlined_call_operand.vmem [shape: f32[2,1,8], index: 1, kind: input, shape index: {}]   ;;  %s3765_s2 = inlined_call_operand.vmem [shape: f32[1,32], index: 2, kind: input, shape index: {}]   ;;  %s3766_s3 = inlined_call_operand.vmem [shape: f32[1,32], index: 3, kind: input, shape index: {}]   ;;  %s3767_s4 = inlined_call_operand.vmem [shape: bf16[2,32,96], index: 4, kind: input, shape index: {}]   ;;  %s3768_s5 = inlined_call_operand.vmem [shape: f32[2,1,96], index: 5, kind: input, shape index: {}]   ;;  %s3769_s6 = inlined_call_operand.vmem [shape: bf16[2,32,32], index: 6, kind: input, shape index: {}]   ;;  %s3770_s7 = inlined_call_operand.vmem [shape: f32[2,1,32], index: 7, kind: input, shape index: {}]   ;;  %s3771_s8 = inlined_call_operand.vmem [shape: f32[2,1,32], index: 8, kind: input, shape index: {}]   ;;  %s3772_s9 = inlined_call_operand.vmem [shape: f32[2,1,32], index: 9, kind: input, shape index: {}]   ;;  %s3773_s10 = inlined_call_operand.vmem [shape: bf16[2,32,64], index: 10, kind: input, shape index: {}]   ;;  %s3774_s11 = inlined_call_operand.vmem [shape: f32[2,1,64], index: 11, kind: input, shape index: {}]   ;;  %s3775_s12 = inlined_call_operand.vmem [shape: bf16[2,64,32], index: 12, kind: input, shape index: {}]   ;;  %s3776_s13 = inlined_call_operand.vmem [shape: f32[2,1,32], index: 13, kind: input, shape index: {}]   ;;  %s3777_s14 = inlined_call_operand.vmem [shape: f32[2,1,32], index: 14, kind: input, shape index: {}]   ;;  %s3778_s15 = inlined_call_operand.vmem [shape: f32[2,1,32], index: 15, kind: input, shape index: {}]   ;;  %s3779_s16 = inlined_call_operand.hbm [shape: f32[2,1,32], index: 16, kind: output, shape index: {}]  }
   0x1   :  { %3791 = sst [smem:[#allocation9_spill]] %s3763_s0 }
   0x2   :  { %3792 = sst [smem:[#allocation10_spill]] %s3764_s1 }
   0x3   :  { %3793 = sst [smem:[#allocation11_spill]] %s3765_s2 }
   0x4   :  { %3794 = sst [smem:[#allocation12_spill]] %s3766_s3 }
   0x5   :  { %3795 = sst [smem:[#allocation13_spill]] %s3767_s4 }
   0x6   :  { %21 = vsyncpa [#allocation5], 0 }
   0x7   :  { %23 = vsyncpa [#allocation5 + $0x1], 0  ;;  %s3329_s21 = smov 0   ;;  %s3331_s22 = smov 0  }
   0x8   :  { %s3333_s23 = smov 0   ;;  %s3335_s24 = smov 0  }
   0x9 LB: > { %3796 = sst [smem:[#allocation7_spill]] %s3227_s23  ;;  %s3350_s25 = sadd.s32 4294967295, %s3231_s24   ;;  %s3231_s24 = sphi %s3335_s24, %s3817_s24   ;;  %s3227_s23 = sphi %s3333_s23, %s3814_s23   ;;  %s3223_s22 = sphi %s3331_s22, %s3816_s22   ;;  %s3219_s21 = sphi %s3329_s21, %s3815_s21  }
   0xa   : > { %s2737_s26 = sadd.s32 4294967294, %s3231_s24   ;;  %s3354_s27 = sadd.s32 1, %s3231_s24  }
   0xb   : > { %s382_s28 = sadd.s32 1, %s3227_s23  ;;  %s379_s29 = ssub.s32 %s3231_s24, %s3354_s27 }
   0xc   : > { %p392_p0 = scmp.ne.s32.totalorder %s3227_s23, %s3223_s22  ;;  %p380_p1 = scmp.eq.s32.totalorder %s379_s29, 0 }
   0xd   : > { %p393_p2 = scmp.eq.s32.totalorder %s3350_s25, 1  ;;  %p398_p3 = scmp.ne.s32.totalorder %s3223_s22, %s3219_s21 }
   0xe   : > { %p399_p4 = scmp.eq.s32.totalorder %s2737_s26, 1  ;;  %p2740_p7 = scmp.ge.s32.totalorder %s3231_s24, 1 }
   0xf   : > { %s3365_s30 = scalar_select %p380_p1, %s3227_s23, %s382_s28  }
  0x10   : > { %p3367_p5 = por %p393_p2, %p392_p0  ;;  %p3371_p6 = por %p399_p4, %p398_p3 }
  0x11   : > { %3797 = sst [smem:[#allocation8_spill]] %s3365_s30  ;;  %p472_p8 = scmp.lt.s32.totalorder %s3231_s24, 3 }
  0x13   : > { %p473_p9 = pnand %p2740_p7, %p472_p8 }
  0x14   : > { %p523_p10 = scmp.lt.s32.totalorder (!%p473_p9), %s3350_s25, 1  ;;  %s3800_s28 = sld [smem:[#allocation9_spill]] (!%p473_p9) }
  0x15   : > { %476 = sbr.rel (%p473_p9) target bundleno = 5380 (0x1504), region = 84  ;;  %s3801_s4 = sld [smem:[#allocation13_spill]] (!%p473_p9) }
  0x16   : > { %s3802_s2 = sld [smem:[#allocation11_spill]] (!%p473_p9)  ;;  %s3785_s20 = smov (!%p473_p9), 104  }
  0x17   : > { %s3803_s3 = sld [smem:[#allocation12_spill]] (!%p473_p9)  ;;  %s3789_s23 = smov (!%p473_p9), 120  }
  0x18   : > { %s3790_s30 = smov (!%p473_p9), 112   ;;  %s3783_s26 = smov (!%p473_p9), 96  }
  0x19   : > { %s3804_s1 = sld [smem:[#allocation10_spill]] (!%p473_p9) }
  0x1a   : > { %s3379_s18 = scalar_select %p523_p10, %s3350_s25, 1  ;;  %vm534_vm0 = vcmask 261120   ;;  %v3233_v8 = vmov 0.0   ;;  %vm3234_vm1 = vmmov 0   ;;  %v2744_v20 = vld [vmem:[%s3768_s5] ss:$0 sm:$0xff] }
  0x1b   : > { %v3105_v7 = vld [vmem:[%s3801_s4 + $0x8] sm:$0xff]   ;;  %2904 = vmatprep.subr.bf16.mxu0 %v3233_v8  ;;  %2908 = vmatprep.mubr.msk.bf16.mxu0 %vm3234_vm1, %v3233_v8  ;;  %v3106_v9 = vld [vmem:[%s3801_s4] sm:$0xff]   ;;  %vm631_vm2 = vcmask 785408   ;;  %vm649_vm3 = vcmask 64512   ;;  %vm1305_vm4 = vcmask 130112   ;;  %vm1311_vm5 = vcmask 195712  }
  0x1c   : > { %s2741_s19 = sshll.u32 %s3379_s18, 3  ;;  %2905 = vmatpush3.bf16.msra.mxu0 %v3105_v7  ;;  %2917 = vmatprep.subr.mxu1 %v3233_v8  ;;  %v2742_v14 = vld [vmem:[%s3802_s2] ss:$0 sm:$0xff]  ;;  %vm1317_vm6 = vcmask 261312   ;;  %vm1533_vm7 = vcmask 523264   ;;  %vm2658_vm8 = vcmask 253952  }
  0x1d   : > { %s526_s29 = scalar_lea.vmem %s3800_s28, %s2741_s19  ;;  %2906 = vmatprep.subr.bf16.mxu0 %v3233_v8  ;;  %2919 = vmatprep.mubr.msk.f32.mxu1 %vm3234_vm1, %v3233_v8  ;;  %v2743_v16 = vld [vmem:[%s3803_s3] ss:$0 sm:$0xff]  ;;  %s3786_s28 = smov 24  }
  0x1e   : > { %v531_v0 = vld [vmem:[%s526_s29] sm:$0xff]  ;;  %s3808_s29 = smov 96   ;;  %s3243_s2 = smov [#allocation4]  }
  0x1f   : > { %v535_v1 = vsel %vm534_vm0, %v531_v0, 0.0  ;;  %s529_s19 = scalar_lea.vmem %s3804_s1, %s3379_s18  ;;  %s3781_s18 = smov 64  }
  0x20   : > { %536 = vadd.xlane.f32.xlu0 %v535_v1  ;;  %2907 = vmatpush3.bf16.msra.mxu0 %v3106_v9  ;;  %v3457_v34 = vld [vmem:[%s529_s19] ss:$0 sm:$0xff]  ;;  %s3805_s19 = smov 112   ;;  %s3175_s3 = sshll.u32 %s3243_s2, 4  ;;  %s3176_s3 = int_to_ptr.vmem [resolvable:$false] %s3175_s3 }
  0x21   : > { %2912 = vmatprep.subr.mxu0 %v3233_v8 }
  0xa9   : > { %v537_v2 = vpop.xlane.xlu0 %536 }
  0xaa   : > { %v539_v3 = vmul.f32 0.03125, %v537_v2 }
  0xac   : > { %v540_v4 = vsub.f32 %v531_v0, %v539_v3 }
  0xae   : > { %v541_v5 = vmul.f32 %v540_v4, %v540_v4 }
  0xb0   : > { %v542_v6 = vsel %vm534_vm0, %v541_v5, 0.0 }
  0xb1   : > { %543 = vadd.xlane.f32.xlu0 %v542_v6 }
 0x13a   : > { %v544_v10 = vpop.xlane.xlu0 %543 }
 0x13b   : > { %v545_v11 = vmul.f32 0.03125, %v544_v10 }
 0x13d   : > { %v546_v12 = vadd.f32 1e-05, %v545_v11 }
 0x13f   : > { %3125 = vrsqrt.f32 %v546_v12 }
 0x14c   : > { %v3126_v13 = vpop.eup %3125 }
 0x14d   : > { %v548_v15 = vmul.f32 %v3126_v13, %v540_v4 }
 0x14f   : > { %v555_v17 = vmul.f32 %v2742_v14, %v548_v15 }
 0x151   : > { %v3407_v18 = vadd.f32 %v2743_v16, %v555_v17 }
 0x153   : > { %v564_v19 = vpack.c.bf16 %v3407_v18, %v3407_v18 }
 0x155   : > { %2909 = vmatmul.mubr.msk.bf16.vlgmr.msra.gmra.mxu0 %vm534_vm0, %v564_v19 }
 0x156   : > { %2914 = vmatprep.mubr.msk.f32.mxu0 %vm3234_vm1, %v3233_v8 }
 0x215   : > { %v625_v21 = vpop.f32.mrf.mxu0 }
 0x216   : > { %v626_v22 = vadd.f32 %v2744_v20, %v625_v21 }
 0x217   : > { %v2910_v23 = vpop.f32.mrf.mxu0 }
 0x218   : > { %632 = vst.msk [vmem:[#allocation2] sm:$0xff] %vm631_vm2, %v626_v22 }
 0x219   : > { %v628_v24 = vpop.f32.mrf.mxu0 }
 0x21b   : > { %v2911_v25 = vpop.f32.mrf.mxu0 }
 0x21f   : > { %v633_v26 = vld [vmem:[#allocation2] sm:$0xff] }
 0x220   : > { %639 = vrot.lane.b32.xlu0 %v633_v26, %s3785_s20  ;;  %635 = vrot.lane.b32.xlu1 %v633_v26, %s3789_s23  ;;  %s3788_s20 = smov 16   ;;  %s3809_s23 = smov 64  }
 0x224   : > { %637 = vrot.lane.b32.xlu1 %v633_v26, %s3790_s30 }
 0x228   : > { %647 = vrot.lane.b32.xlu1 %v633_v26, %s3783_s26 }
 0x292   : > { %v3422_v27 = vpop.permute.xlu1 %635  ;;  %v3427_v29 = vpop.permute.xlu0 %639 }
 0x293   : > { %724 = vrot.lane.b32.xlu1 %v3422_v27, %s3783_s26 }
 0x296   : > { %v638_v28 = vpop.permute.xlu1 %637 }
 0x297   : > { %800 = vrot.lane.b32.xlu1 %v638_v28, %s3783_s26 }
 0x29a   : > { %v648_v30 = vpop.permute.xlu1 %647 }
 0x29b   : > { %876 = vrot.lane.b32.xlu1 %v3427_v29, %s3783_s26  ;;  %2913 = vmatpush3.xpose.msk.msra.mxu0 %vm649_vm3, %v648_v30  ;;  %s3787_s26 = smov 8  }
 0x29c   : > { %2927 = vmatprep.subr.mxu0 %v3233_v8 }
 0x29e   : > { %2915 = vmatmul.mubr.msk.f32.vlgmr.msra.gmra.mxu0 %vm649_vm3, %v633_v26 }
 0x29f   : > { %2929 = vmatprep.mubr.msk.f32.mxu0 %vm3234_vm1, %v3233_v8 }
 0x305   : > { %v725_v31 = vpop.permute.xlu1 %724 }
 0x306   : > { %2918 = vmatpush3.xpose.msk.msra.mxu1 %vm649_vm3, %v725_v31 }
 0x307   : > { %2922 = vmatprep.subr.mxu1 %v3233_v8 }
 0x309   : > { %2920 = vmatmul.mubr.msk.f32.vlgmr.msra.gmra.mxu1 %vm649_vm3, %v3422_v27  ;;  %v801_v32 = vpop.permute.xlu1 %800 }
 0x30a   : > { %2923 = vmatpush3.xpose.msk.msra.mxu1 %vm649_vm3, %v801_v32  ;;  %2924 = vmatprep.mubr.msk.f32.mxu1 %vm3234_vm1, %v3233_v8 }
 0x30b   : > { %2932 = vmatprep.subr.mxu1 %v3233_v8 }
 0x30d   : > { %2925 = vmatmul.mubr.msk.f32.vlgmr.msra.gmra.mxu1 %vm649_vm3, %v638_v28  ;;  %v877_v33 = vpop.permute.xlu1 %876 }
 0x30e   : > { %2928 = vmatpush3.xpose.msk.msra.mxu0 %vm649_vm3, %v877_v33  ;;  %2934 = vmatprep.mubr.msk.f32.mxu1 %vm3234_vm1, %v3233_v8 }
 0x30f   : > { %2937 = vmatprep.subr.mxu0 %v3233_v8 }
 0x311   : > { %2930 = vmatmul.mubr.msk.f32.vlgmr.msra.gmra.mxu0 %vm649_vm3, %v3427_v29 }
 0x312   : > { %2939 = vmatprep.mubr.msk.f32.mxu0 %vm3234_vm1, %v3233_v8 }
 0x35e   : > { %v720_v35 = vpop.f32.mrf.mxu0 }
 0x35f   : > { %v721_v36 = vadd.f32 %v3457_v34, %v720_v35 }
 0x360   : > { %v2916_v37 = vpop.f32.mrf.mxu0 }
 0x361   : > { %v952_v38 = vsel %vm649_vm3, %v721_v36, -inf }
 0x362   : > { %953 = vmax.xlane.f32.xlu1 %v952_v38 }
 0x3c9   : > { %v796_v39 = vpop.f32.mrf.mxu1 }
 0x3ca   : > { %v797_v40 = vadd.f32 %v3457_v34, %v796_v39 }
 0x3cb   : > { %v2921_v41 = vpop.f32.mrf.mxu1 }
 0x3cc   : > { %v955_v42 = vsel %vm649_vm3, %v797_v40, -inf  ;;  %v2761_v41 = vld [vmem:[%s3770_s7] ss:$0 sm:$0xff] }
 0x3cd   : > { %956 = vmax.xlane.f32.xlu0 %v955_v42  ;;  %v872_v43 = vpop.f32.mrf.mxu1 }
 0x3ce   : > { %v873_v44 = vadd.f32 %v3457_v34, %v872_v43 }
 0x3cf   : > { %v2926_v45 = vpop.f32.mrf.mxu1 }
 0x3d0   : > { %v958_v46 = vsel %vm649_vm3, %v873_v44, -inf }
 0x3d1   : > { %959 = vmax.xlane.f32.xlu1 %v958_v46  ;;  %v948_v47 = vpop.f32.mrf.mxu0 }
 0x3d2   : > { %v949_v48 = vadd.f32 %v3457_v34, %v948_v47 }
 0x3d3   : > { %v2931_v49 = vpop.f32.mrf.mxu0 }
 0x3d4   : > { %v961_v50 = vsel %vm649_vm3, %v949_v48, -inf }
 0x3d5   : > { %962 = vmax.xlane.f32.xlu0 %v961_v50 }
 0x3e2   : > { %996 = vrot.lane.b32.xlu1 %v633_v26, %s3781_s18 }
 0x3eb   : > { %v954_v51 = vpop.xlane.xlu1 %953 }
 0x3ec   : > { %v964_v52 = vsub.f32 %v721_v36, %v954_v51 }
 0x3ee   : > { %v968_v53 = vmul.f32 1.442695, %v964_v52 }
 0x3f0   : > { %3127 = vpow2.f32 %v968_v53 }
 0x3fd   : > { %v3128_v54 = vpop.eup %3127 }
 0x3fe   : > { %v976_v55 = vsel %vm649_vm3, %v3128_v54, 0.0 }
 0x406   : > { %977 = vadd.xlane.f32.xlu1 %v976_v55 }
 0x417   : > { %1148 = vrot.lane.b32.xlu1 %v638_v28, %s3781_s18  ;;  %v3108_v28 = vld [vmem:[%s3769_s6] sm:$0xff]  }
 0x456   : > { %v957_v56 = vpop.xlane.xlu0 %956 }
 0x457   : > { %v965_v57 = vsub.f32 %v797_v40, %v957_v56 }
 0x459   : > { %v970_v58 = vmul.f32 1.442695, %v965_v57 }
 0x45a   : > { %v960_v59 = vpop.xlane.xlu1 %959 }
 0x45b   : > { %3129 = vpow2.f32 %v970_v58  ;;  %v966_v60 = vsub.f32 %v873_v44, %v960_v59  ;;  %v2765_v59 = vld [vmem:[%s3771_s8] ss:$0 sm:$0xff] }
 0x45d   : > { %v972_v61 = vmul.f32 1.442695, %v966_v60 }
 0x45e   : > { %v997_v62 = vpop.permute.xlu1 %996  ;;  %v963_v63 = vpop.xlane.xlu0 %962 }
 0x45f   : > { %3131 = vpow2.f32 %v972_v61  ;;  %v967_v0 = vsub.f32 %v949_v48, %v963_v63  ;;  %2933 = vmatpush3.msra.mxu1 %v997_v62  ;;  %v2766_v61 = vld [vmem:[%s3772_s9] ss:$0 sm:$0xff] }
 0x460   : > { %2942 = vmatprep.subr.mxu1 %v3233_v8 }
 0x461   : > { %v974_v1 = vmul.f32 1.442695, %v967_v0 }
 0x463   : > { %3133 = vpow2.f32 %v974_v1  ;;  %v3111_v1 = vld [vmem:[%s3775_s12 + $0x18] sm:$0xff]  }
 0x468   : > { %v3130_v2 = vpop.eup %3129 }
 0x469   : > { %v979_v3 = vsel %vm649_vm3, %v3130_v2, 0.0 }
 0x46a   : > { %980 = vadd.xlane.f32.xlu0 %v979_v3  ;;  %v3113_v3 = vld [vmem:[%s3775_s12 + $0x8] sm:$0xff]  }
 0x46c   : > { %v3132_v4 = vpop.eup %3131 }
 0x46d   : > { %v982_v5 = vsel %vm649_vm3, %v3132_v4, 0.0 }
 0x46e   : > { %983 = vadd.xlane.f32.xlu1 %v982_v5  ;;  %v2767_v5 = vld [vmem:[%s3774_s11] ss:$0 sm:$0xff] }
 0x470   : > { %v3134_v6 = vpop.eup %3133 }
 0x471   : > { %v985_v7 = vsel %vm649_vm3, %v3134_v6, 0.0 }
 0x472   : > { %986 = vadd.xlane.f32.xlu0 %v985_v7 }
 0x47f   : > { %1224 = vrot.lane.b32.xlu1 %v3427_v29, %s3781_s18 }
 0x488   : > { %1072 = vrot.lane.b32.xlu0 %v3422_v27, %s3781_s18  ;;  %v3107_v27 = vld [vmem:[%s3769_s6 + $0x8] sm:$0xff]   ;;  %s3806_s18 = smov 120  }
 0x48f   : > { %v978_v9 = vpop.xlane.xlu1 %977 }
 0x490   : > { %3135 = vrcp.f32 %v978_v9 }
 0x493   : > { %v1149_v12 = vpop.permute.xlu1 %1148 }
 0x49d   : > { %v3136_v10 = vpop.eup %3135 }
 0x49e   : > { %v992_v11 = vmul.f32 %v3136_v10, %v3128_v54  ;;  %v3109_v54 = vld [vmem:[%s3773_s10 + $0x8] sm:$0xff]  }
 0x4a0   : > { %2935 = vmatmul.mubr.msk.f32.vlgmr.msra.gmra.mxu1 %vm649_vm3, %v992_v11 }
 0x4a1   : > { %2943 = vmatpush3.msra.mxu1 %v1149_v12  ;;  %2944 = vmatprep.mubr.msk.f32.mxu1 %vm3234_vm1, %v3233_v8 }
 0x4a2   : > { %2952 = vmatprep.subr.bf16.mxu1 %v3233_v8 }
 0x4f3   : > { %v981_v13 = vpop.xlane.xlu0 %980 }
 0x4f4   : > { %3137 = vrcp.f32 %v981_v13 }
 0x4f7   : > { %v984_v14 = vpop.xlane.xlu1 %983 }
 0x4f8   : > { %3139 = vrcp.f32 %v984_v14 }
 0x4fb   : > { %v987_v15 = vpop.xlane.xlu0 %986  ;;  %v1225_v20 = vpop.permute.xlu1 %1224 }
 0x4fc   : > { %3141 = vrcp.f32 %v987_v15 }
 0x4ff   : > { %v1073_v16 = vpop.permute.xlu0 %1072 }
 0x500   : > { %2938 = vmatpush3.msra.mxu0 %v1073_v16 }
 0x501   : > { %v3138_v17 = vpop.eup %3137  ;;  %2947 = vmatprep.subr.mxu0 %v3233_v8 }
 0x502   : > { %v993_v19 = vmul.f32 %v3138_v17, %v3130_v2  ;;  %v3112_v2 = vld [vmem:[%s3775_s12 + $0x10] sm:$0xff]  }
 0x504   : > { %2940 = vmatmul.mubr.msk.f32.vlgmr.msra.gmra.mxu0 %vm649_vm3, %v993_v19 }
 0x505   : > { %v3140_v21 = vpop.eup %3139  ;;  %2948 = vmatpush3.msra.mxu0 %v1225_v20  ;;  %2949 = vmatprep.mubr.msk.f32.mxu0 %vm3234_vm1, %v3233_v8 }
 0x506   : > { %v994_v22 = vmul.f32 %v3140_v21, %v3132_v4  ;;  %2960 = vmatprep.subr.bf16.mxu0 %v3233_v8  ;;  %v3114_v4 = vld [vmem:[%s3775_s12] sm:$0xff]  }
 0x508   : > { %2945 = vmatmul.mubr.msk.f32.vlgmr.msra.gmra.mxu1 %vm649_vm3, %v994_v22 }
 0x509   : > { %v3142_v23 = vpop.eup %3141  ;;  %2956 = vmatprep.mubr.msk.bf16.mxu1 %vm3234_vm1, %v3233_v8  ;;  %2953 = vmatpush3.bf16.msra.mxu1 %v3107_v27 }
 0x50a   : > { %v995_v24 = vmul.f32 %v3142_v23, %v3134_v6  ;;  %2954 = vmatprep.subr.bf16.mxu1 %v3233_v8  ;;  %v2771_v23 = vld [vmem:[%s3776_s13] ss:$0 sm:$0xff] }
 0x50c   : > { %2950 = vmatmul.mubr.msk.f32.vlgmr.msra.gmra.mxu0 %vm649_vm3, %v995_v24 }
 0x50d   : > { %2964 = vmatprep.mubr.msk.bf16.mxu0 %vm3234_vm1, %v3233_v8  ;;  %2955 = vmatpush3.bf16.msra.mxu1 %v3108_v28 }
 0x50e   : > { %2968 = vmatprep.subr.bf16.mxu1 %v3233_v8  ;;  %2961 = vmatpush3.bf16.msra.mxu0 %v3109_v54 }
 0x50f   : > { %2962 = vmatprep.subr.bf16.mxu0 %v3233_v8 }
 0x560   : > { %v1068_v25 = vpop.f32.mrf.mxu1 }
 0x561   : > { %1300 = vst.msk [vmem:[#allocation3] sm:$0xff] %vm649_vm3, %v1068_v25 }
 0x562   : > { %v2936_v26 = vpop.f32.mrf.mxu1 }
 0x5c4   : > { %v1144_v29 = vpop.f32.mrf.mxu0 }
 0x5c5   : > { %1302 = vrot.lane.b32.xlu0 %v1144_v29, %s3787_s26  ;;  %s2841_s26 = sshll.u32 %s3350_s25, 4  ;;  %s3177_s25 = scalar_lea.vmem %s3176_s3, 32 }
 0x5c6   : > { %v2941_v30 = vpop.f32.mrf.mxu0 }
 0x5c8   : > { %v1220_v31 = vpop.f32.mrf.mxu1 }
 0x5c9   : > { %1308 = vrot.lane.b32.xlu1 %v1220_v31, %s3788_s20  ;;  %s521_s20 = sand.u32 1, %s3223_s22  }
 0x5ca   : > { %v2946_v32 = vpop.f32.mrf.mxu1  ;;  %s2661_s30 = scalar_lea.sflag [#allocation5], %s521_s20 }
 0x5cc   : > { %v1296_v33 = vpop.f32.mrf.mxu0 }
 0x5cd   : > { %1314 = vrot.lane.b32.xlu0 %v1296_v33, %s3786_s28  ;;  %s3807_s28 = smov 104  }
 0x5ce   : > { %v2951_v35 = vpop.f32.mrf.mxu0 }
 0x637   : > { %v1303_v36 = vpop.permute.xlu0 %1302 }
 0x638   : > { %1306 = vst.msk [vmem:[#allocation3] sm:$0xff] %vm1305_vm4, %v1303_v36 }
 0x63b   : > { %v1309_v37 = vpop.permute.xlu1 %1308 }
 0x63c   : > { %1312 = vst.msk [vmem:[#allocation3] sm:$0xff] %vm1311_vm5, %v1309_v37  ;;  %v3115_v37 = vld [vmem:[%s3801_s4 + $0x18] sm:$0xff]  }
 0x63f   : > { %v1315_v38 = vpop.permute.xlu0 %1314 }
 0x640   : > { %1318 = vst.msk [vmem:[#allocation3] sm:$0xff] %vm1317_vm6, %v1315_v38  ;;  %v3116_v38 = vld [vmem:[%s3801_s4 + $0x10] sm:$0xff]  }
 0x647   : > { %v1319_v39 = vld [vmem:[#allocation3] sm:$0xff] }
 0x648   : > { %v1320_v40 = vpack.c.bf16 %v1319_v39, %v1319_v39 }
 0x64a   : > { %2957 = vmatmul.mubr.msk.bf16.vlgmr.msra.gmra.mxu1 %vm534_vm0, %v1320_v40 }
 0x64b   : > { %2976 = vmatprep.mubr.msk.bf16.mxu1 %vm3234_vm1, %v3233_v8  ;;  %2969 = vmatpush3.bf16.msra.mxu1 %v3111_v1 }
 0x64c   : > { %2970 = vmatprep.subr.bf16.mxu1 %v3233_v8 }
 0x64f   : > { %2971 = vmatpush3.bf16.msra.mxu1 %v3112_v2 }
 0x650   : > { %2972 = vmatprep.subr.bf16.mxu1 %v3233_v8 }
 0x653   : > { %2973 = vmatpush3.bf16.msra.mxu1 %v3113_v3 }
 0x654   : > { %2974 = vmatprep.subr.bf16.mxu1 %v3233_v8 }
 0x657   : > { %2975 = vmatpush3.bf16.msra.mxu1 %v3114_v4 }
 0x658   : > { %2998 = vmatprep.subr.mxu1 %v3233_v8 }
 0x70a   : > { %v1381_v42 = vpop.f32.mrf.mxu1 }
 0x70b   : > { %v1382_v43 = vadd.f32 %v2761_v41, %v1381_v42 }
 0x70c   : > { %v2958_v44 = vpop.f32.mrf.mxu1 }
 0x70d   : > { %v1387_v45 = vadd.f32 %v1382_v43, %v3407_v18  ;;  %v3110_v18 = vld [vmem:[%s3773_s10] sm:$0xff]  }
 0x70e   : > { %v1384_v46 = vpop.f32.mrf.mxu1  ;;  %2963 = vmatpush3.bf16.msra.mxu0 %v3110_v18  ;;  %v2777_v43 = vld [vmem:[%s3777_s14] ss:$0 sm:$0xff] }
 0x70f   : > { %v1390_v47 = vsel %vm534_vm0, %v1387_v45, 0.0  ;;  %2980 = vmatprep.subr.bf16.mxu0 %v3233_v8 }
 0x710   : > { %1391 = vadd.xlane.f32.xlu1 %v1390_v47  ;;  %v2959_v48 = vpop.f32.mrf.mxu1 }
 0x799   : > { %v1392_v49 = vpop.xlane.xlu1 %1391 }
 0x79a   : > { %v1393_v50 = vmul.f32 0.03125, %v1392_v49  ;;  %v2784_v49 = vld [vmem:[%s3768_s5 + $0x1] ss:$0 sm:$0xff] }
 0x79c   : > { %v1394_v51 = vsub.f32 %v1387_v45, %v1393_v50  ;;  %v2778_v45 = vld [vmem:[%s3778_s15] ss:$0 sm:$0xff] }
 0x79e   : > { %v1395_v52 = vmul.f32 %v1394_v51, %v1394_v51 }
 0x7a0   : > { %v1396_v53 = vsel %vm534_vm0, %v1395_v52, 0.0 }
 0x7a1   : > { %1397 = vadd.xlane.f32.xlu0 %v1396_v53 }
 0x82a   : > { %v1398_v55 = vpop.xlane.xlu0 %1397 }
 0x82b   : > { %v1399_v56 = vmul.f32 0.03125, %v1398_v55 }
 0x82d   : > { %v1400_v57 = vadd.f32 1e-05, %v1399_v56 }
 0x82f   : > { %3143 = vrsqrt.f32 %v1400_v57 }
 0x83c   : > { %v3144_v58 = vpop.eup %3143 }
 0x83d   : > { %v1402_v60 = vmul.f32 %v3144_v58, %v1394_v51 }
 0x83f   : > { %v1409_v62 = vmul.f32 %v2765_v59, %v1402_v60 }
 0x841   : > { %v1416_v63 = vadd.f32 %v2766_v61, %v1409_v62 }
 0x843   : > { %v1417_v0 = vpack.c.bf16 %v1416_v63, %v1416_v63 }
 0x845   : > { %2965 = vmatmul.mubr.msk.bf16.vlgmr.msra.gmra.mxu0 %vm534_vm0, %v1417_v0 }
 0x846   : > { %2984 = vmatprep.mubr.msk.bf16.mxu0 %vm3234_vm1, %v3233_v8  ;;  %2981 = vmatpush3.bf16.msra.mxu0 %v3115_v37 }
 0x847   : > { %2982 = vmatprep.subr.bf16.mxu0 %v3233_v8 }
 0x84a   : > { %2983 = vmatpush3.bf16.msra.mxu0 %v3116_v38 }
 0x84b   : > { %2988 = vmatprep.subr.mxu0 %v3233_v8 }
 0x905   : > { %v1478_v6 = vpop.f32.mrf.mxu0 }
 0x906   : > { %v1479_v7 = vadd.f32 %v2767_v5, %v1478_v6 }
 0x907   : > { %v2966_v9 = vpop.f32.mrf.mxu0 }
 0x908   : > { %v1485_v10 = vmul.f32 0.044715, %v1479_v7  ;;  %v1484_v19 = vmul.f32 0.5, %v1479_v7 }
 0x909   : > { %v1481_v11 = vpop.f32.mrf.mxu0 }
 0x90a   : > { %v1486_v12 = vmul.f32 %v1485_v10, %v1479_v7 }
 0x90b   : > { %v2967_v13 = vpop.f32.mrf.mxu0 }
 0x90c   : > { %v1487_v14 = vmul.f32 %v1486_v12, %v1479_v7 }
 0x90e   : > { %v1488_v15 = vadd.f32 %v1487_v14, %v1479_v7 }
 0x910   : > { %v1489_v16 = vmul.f32 0.7978846, %v1488_v15 }
 0x912   : > { %3145 = vtanh.f32 %v1489_v16 }
 0x91f   : > { %v3146_v17 = vpop.eup %3145 }
 0x920   : > { %v1491_v20 = vadd.f32 1.0, %v3146_v17 }
 0x922   : > { %v1492_v21 = vmul.f32 %v1491_v20, %v1484_v19 }
 0x924   : > { %v1493_v22 = vpack.c.bf16 %v1492_v21, %v1492_v21 }
 0x926   : > { %2977 = vmatmul.mubr.msk.bf16.vlgmr.msra.gmra.mxu1 %vm1533_vm7, %v1493_v22 }
 0x927   : > { %3000 = vmatprep.mubr.msk.f32.mxu1 %vm3234_vm1, %v3233_v8 }
 0x9e6   : > { %v1571_v24 = vpop.f32.mrf.mxu1 }
 0x9e7   : > { %v1572_v25 = vadd.f32 %v2771_v23, %v1571_v24 }
 0x9e8   : > { %v2978_v26 = vpop.f32.mrf.mxu1 }
 0x9e9   : > { %v1577_v27 = vadd.f32 %v1572_v25, %v1416_v63 }
 0x9ea   : > { %v1574_v28 = vpop.f32.mrf.mxu1 }
 0x9eb   : > { %v1580_v29 = vsel %vm534_vm0, %v1577_v27, 0.0 }
 0x9ec   : > { %1581 = vadd.xlane.f32.xlu0 %v1580_v29  ;;  %v2979_v30 = vpop.f32.mrf.mxu1 }
 0xa75   : > { %v1582_v31 = vpop.xlane.xlu0 %1581 }
 0xa76   : > { %v1583_v32 = vmul.f32 0.03125, %v1582_v31 }
 0xa78   : > { %v1584_v33 = vsub.f32 %v1577_v27, %v1583_v32 }
 0xa7a   : > { %v1585_v35 = vmul.f32 %v1584_v33, %v1584_v33 }
 0xa7c   : > { %v1586_v36 = vsel %vm534_vm0, %v1585_v35, 0.0 }
 0xa7d   : > { %1587 = vadd.xlane.f32.xlu1 %v1586_v36 }
 0xb06   : > { %v1588_v39 = vpop.xlane.xlu1 %1587 }
 0xb07   : > { %v1589_v40 = vmul.f32 0.03125, %v1588_v39 }
 0xb09   : > { %v1590_v41 = vadd.f32 1e-05, %v1589_v40 }
 0xb0b   : > { %3147 = vrsqrt.f32 %v1590_v41 }
 0xb18   : > { %v3148_v42 = vpop.eup %3147 }
 0xb19   : > { %v1592_v44 = vmul.f32 %v3148_v42, %v1584_v33 }
 0xb1b   : > { %v1599_v46 = vmul.f32 %v2777_v43, %v1592_v44 }
 0xb1d   : > { %v3575_v47 = vadd.f32 %v2778_v45, %v1599_v46 }
 0xb1f   : > { %v1607_v48 = vpack.c.bf16 %v3575_v47, %v3575_v47 }
 0xb21   : > { %2985 = vmatmul.mubr.msk.bf16.vlgmr.msra.gmra.mxu0 %vm534_vm0, %v1607_v48 }
 0xb22   : > { %2990 = vmatprep.mubr.msk.f32.mxu0 %vm3234_vm1, %v3233_v8 }
 0xbe1   : > { %v1670_v50 = vpop.f32.mrf.mxu0 }
 0xbe2   : > { %v1671_v51 = vadd.f32 %v2784_v49, %v1670_v50 }
 0xbe3   : > { %v2986_v52 = vpop.f32.mrf.mxu0 }
 0xbe4   : > { %1676 = vst.msk [vmem:[#allocation2] sm:$0xff] %vm631_vm2, %v1671_v51 }
 0xbe5   : > { %v1673_v53 = vpop.f32.mrf.mxu0 }
 0xbe7   : > { %v2987_v54 = vpop.f32.mrf.mxu0 }
 0xbeb   : > { %v1677_v18 = vld [vmem:[#allocation2] sm:$0xff] }
 0xbec   : > { %1681 = vrot.lane.b32.xlu1 %v1677_v18, %s3805_s19  ;;  %1679 = vrot.lane.b32.xlu0 %v1677_v18, %s3806_s18  ;;  %s3810_s18 = smov 16   ;;  %s522_s19 = scalar_lea.vmem [#allocation4], %s521_s20 }
 0xbf0   : > { %1683 = vrot.lane.b32.xlu1 %v1677_v18, %s3807_s28  ;;  %1685 = vrot.lane.b32.xlu0 %v1677_v18, %s3808_s29  ;;  %s3811_s28 = smov 8  }
 0xc5e   : > { %v3590_v55 = vpop.permute.xlu1 %1681  ;;  %v3592_v56 = vpop.permute.xlu0 %1679 }
 0xc5f   : > { %1837 = vrot.lane.b32.xlu0 %v3590_v55, %s3808_s29  ;;  %1761 = vrot.lane.b32.xlu1 %v3592_v56, %s3808_s29 }
 0xc62   : > { %v3598_v57 = vpop.permute.xlu1 %1683  ;;  %v1686_v58 = vpop.permute.xlu0 %1685 }
 0xc63   : > { %1913 = vrot.lane.b32.xlu1 %v3598_v57, %s3808_s29  ;;  %2989 = vmatpush3.xpose.msk.msra.mxu0 %vm649_vm3, %v1686_v58  ;;  %s3812_s29 = smov 24  }
 0xc64   : > { %2993 = vmatprep.subr.mxu0 %v3233_v8 }
 0xc66   : > { %2991 = vmatmul.mubr.msk.f32.vlgmr.msra.gmra.mxu0 %vm649_vm3, %v1677_v18 }
 0xc67   : > { %2995 = vmatprep.mubr.msk.f32.mxu0 %vm3234_vm1, %v3233_v8 }
 0xcd1   : > { %v1762_v59 = vpop.permute.xlu1 %1761  ;;  %v1838_v60 = vpop.permute.xlu0 %1837 }
 0xcd2   : > { %2994 = vmatpush3.xpose.msk.msra.mxu0 %vm649_vm3, %v1762_v59  ;;  %2999 = vmatpush3.xpose.msk.msra.mxu1 %vm649_vm3, %v1838_v60 }
 0xcd3   : > { %3003 = vmatprep.subr.mxu0 %v3233_v8  ;;  %3008 = vmatprep.subr.mxu1 %v3233_v8 }
 0xcd5   : > { %v1914_v61 = vpop.permute.xlu1 %1913  ;;  %2996 = vmatmul.mubr.msk.f32.vlgmr.msra.gmra.mxu0 %vm649_vm3, %v3592_v56  ;;  %3001 = vmatmul.mubr.msk.f32.vlgmr.msra.gmra.mxu1 %vm649_vm3, %v3590_v55 }
 0xcd6   : > { %3004 = vmatpush3.xpose.msk.msra.mxu0 %vm649_vm3, %v1914_v61  ;;  %3005 = vmatprep.mubr.msk.f32.mxu0 %vm3234_vm1, %v3233_v8 }
 0xcd7   : > { %3010 = vmatprep.mubr.msk.f32.mxu1 %vm3234_vm1, %v3233_v8  ;;  %3013 = vmatprep.subr.mxu0 %v3233_v8 }
 0xcd9   : > { %3006 = vmatmul.mubr.msk.f32.vlgmr.msra.gmra.mxu0 %vm649_vm3, %v3598_v57 }
 0xcda   : > { %3015 = vmatprep.mubr.msk.f32.mxu0 %vm3234_vm1, %v3233_v8 }
 0xd26   : > { %v1757_v62 = vpop.f32.mrf.mxu0 }
 0xd27   : > { %v1758_v63 = vadd.f32 %v3457_v34, %v1757_v62 }
 0xd28   : > { %v2992_v0 = vpop.f32.mrf.mxu0 }
 0xd29   : > { %v1989_v1 = vsel %vm649_vm3, %v1758_v63, -inf }
 0xd2a   : > { %1990 = vmax.xlane.f32.xlu0 %v1989_v1 }
 0xd95   : > { %v1833_v2 = vpop.f32.mrf.mxu0  ;;  %v1909_v3 = vpop.f32.mrf.mxu1 }
 0xd96   : > { %v1834_v4 = vadd.f32 %v3457_v34, %v1833_v2  ;;  %v1910_v5 = vadd.f32 %v3457_v34, %v1909_v3  ;;  %v2805_v3 = vld [vmem:[%s3770_s7 + $0x1] ss:$0 sm:$0xff] }
 0xd97   : > { %v2997_v6 = vpop.f32.mrf.mxu0  ;;  %v3002_v7 = vpop.f32.mrf.mxu1 }
 0xd98   : > { %v1995_v9 = vsel %vm649_vm3, %v1910_v5, -inf  ;;  %v1992_v10 = vsel %vm649_vm3, %v1834_v4, -inf }
 0xd99   : > { %1996 = vmax.xlane.f32.xlu0 %v1995_v9  ;;  %1993 = vmax.xlane.f32.xlu1 %v1992_v10  ;;  %v1985_v11 = vpop.f32.mrf.mxu0 }
 0xd9a   : > { %v1986_v12 = vadd.f32 %v3457_v34, %v1985_v11 }
 0xd9b   : > { %v3007_v13 = vpop.f32.mrf.mxu0 }
 0xd9c   : > { %v1998_v14 = vsel %vm649_vm3, %v1986_v12, -inf }
 0xd9d   : > { %1999 = vmax.xlane.f32.xlu0 %v1998_v14 }
 0xdaa   : > { %2033 = vrot.lane.b32.xlu1 %v1677_v18, %s3809_s23  ;;  %v3117_v18 = vld [vmem:[%s3769_s6 + $0x18] sm:$0xff]  }
 0xdb3   : > { %v1991_v15 = vpop.xlane.xlu0 %1990 }
 0xdb4   : > { %v2001_v16 = vsub.f32 %v1758_v63, %v1991_v15 }
 0xdb6   : > { %v2005_v17 = vmul.f32 1.442695, %v2001_v16 }
 0xdb8   : > { %3149 = vpow2.f32 %v2005_v17  ;;  %v3119_v17 = vld [vmem:[%s3773_s10 + $0x18] sm:$0xff]  }
 0xdc5   : > { %v3150_v19 = vpop.eup %3149 }
 0xdc6   : > { %v2013_v20 = vsel %vm649_vm3, %v3150_v19, 0.0 }
 0xdce   : > { %2014 = vadd.xlane.f32.xlu1 %v2013_v20 }
 0xe22   : > { %v1997_v21 = vpop.xlane.xlu0 %1996  ;;  %v1994_v22 = vpop.xlane.xlu1 %1993 }
 0xe23   : > { %v2003_v23 = vsub.f32 %v1910_v5, %v1997_v21  ;;  %v2002_v24 = vsub.f32 %v1834_v4, %v1994_v22 }
 0xe25   : > { %v2009_v25 = vmul.f32 1.442695, %v2003_v23  ;;  %v2007_v34 = vmul.f32 1.442695, %v2002_v24  ;;  %v2811_v23 = vld [vmem:[%s3771_s8 + $0x1] ss:$0 sm:$0xff] }
 0xe26   : > { %v2034_v26 = vpop.permute.xlu1 %2033  ;;  %v2000_v27 = vpop.xlane.xlu0 %1999 }
 0xe27   : > { %3151 = vpow2.f32 %v2009_v25  ;;  %v2004_v28 = vsub.f32 %v1986_v12, %v2000_v27  ;;  %3009 = vmatpush3.msra.mxu1 %v2034_v26  ;;  %v2812_v25 = vld [vmem:[%s3772_s9 + $0x1] ss:$0 sm:$0xff] }
 0xe28   : > { %3153 = vpow2.f32 %v2007_v34  ;;  %3018 = vmatprep.subr.mxu1 %v3233_v8 }
 0xe29   : > { %v2011_v29 = vmul.f32 1.442695, %v2004_v28  ;;  %v3121_v28 = vld [vmem:[%s3775_s12 + $0x38] sm:$0xff]  }
 0xe2b   : > { %3155 = vpow2.f32 %v2011_v29  ;;  %v3122_v29 = vld [vmem:[%s3775_s12 + $0x30] sm:$0xff]  }
 0xe34   : > { %v3152_v30 = vpop.eup %3151 }
 0xe35   : > { %v3154_v31 = vpop.eup %3153  ;;  %v2019_v32 = vsel %vm649_vm3, %v3152_v30, 0.0 }
 0xe36   : > { %2020 = vadd.xlane.f32.xlu1 %v2019_v32  ;;  %v2016_v33 = vsel %vm649_vm3, %v3154_v31, 0.0  ;;  %v2818_v32 = vld [vmem:[%s3774_s11 + $0x1] ss:$0 sm:$0xff] }
 0xe37   : > { %2017 = vadd.xlane.f32.xlu0 %v2016_v33 }
 0xe38   : > { %v3156_v35 = vpop.eup %3155 }
 0xe39   : > { %v2022_v36 = vsel %vm649_vm3, %v3156_v35, 0.0 }
 0xe3b   : > { %2023 = vadd.xlane.f32.xlu0 %v2022_v36 }
 0xe47   : > { %2185 = vrot.lane.b32.xlu1 %v3590_v55, %s3809_s23  ;;  %v3118_v55 = vld [vmem:[%s3769_s6 + $0x10] sm:$0xff]  }
 0xe4b   : > { %2261 = vrot.lane.b32.xlu1 %v3598_v57, %s3809_s23 }
 0xe51   : > { %2109 = vrot.lane.b32.xlu0 %v3592_v56, %s3809_s23  ;;  %s2671_s23 = scalar_lea.hbm %s3779_s16, %s2841_s26 }
 0xe57   : > { %v2015_v37 = vpop.xlane.xlu1 %2014 }
 0xe58   : > { %3157 = vrcp.f32 %v2015_v37 }
 0xe65   : > { %v3158_v38 = vpop.eup %3157 }
 0xe66   : > { %v2029_v39 = vmul.f32 %v3158_v38, %v3150_v19 }
 0xe68   : > { %3011 = vmatmul.mubr.msk.f32.vlgmr.msra.gmra.mxu1 %vm649_vm3, %v2029_v39 }
 0xe69   : > { %3020 = vmatprep.mubr.msk.f32.mxu1 %vm3234_vm1, %v3233_v8 }
 0xebf   : > { %v2021_v40 = vpop.xlane.xlu1 %2020 }
 0xec0   : > { %3159 = vrcp.f32 %v2021_v40  ;;  %v2018_v41 = vpop.xlane.xlu0 %2017 }
 0xec1   : > { %3161 = vrcp.f32 %v2018_v41 }
 0xec3   : > { %v2186_v42 = vpop.permute.xlu1 %2185 }
 0xec4   : > { %v2024_v43 = vpop.xlane.xlu0 %2023  ;;  %3019 = vmatpush3.msra.mxu1 %v2186_v42 }
 0xec5   : > { %3163 = vrcp.f32 %v2024_v43  ;;  %3028 = vmatprep.subr.bf16.mxu1 %v3233_v8 }
 0xec7   : > { %v2262_v50 = vpop.permute.xlu1 %2261 }
 0xec8   : > { %v2110_v44 = vpop.permute.xlu0 %2109 }
 0xec9   : > { %3014 = vmatpush3.msra.mxu0 %v2110_v44 }
 0xeca   : > { %3023 = vmatprep.subr.mxu0 %v3233_v8 }
 0xecd   : > { %v3160_v45 = vpop.eup %3159 }
 0xece   : > { %v3162_v46 = vpop.eup %3161  ;;  %v2031_v48 = vmul.f32 %v3160_v45, %v3152_v30  ;;  %v3123_v30 = vld [vmem:[%s3775_s12 + $0x28] sm:$0xff]  }
 0xecf   : > { %v2030_v49 = vmul.f32 %v3162_v46, %v3154_v31  ;;  %v3124_v31 = vld [vmem:[%s3775_s12 + $0x20] sm:$0xff]  }
 0xed0   : > { %3021 = vmatmul.mubr.msk.f32.vlgmr.msra.gmra.mxu1 %vm649_vm3, %v2031_v48 }
 0xed1   : > { %3016 = vmatmul.mubr.msk.f32.vlgmr.msra.gmra.mxu0 %vm649_vm3, %v2030_v49  ;;  %3032 = vmatprep.mubr.msk.bf16.mxu1 %vm3234_vm1, %v3233_v8  ;;  %v2831_v49 = vld [vmem:[%s3776_s13 + $0x1] ss:$0 sm:$0xff] }
 0xed2   : > { %v3164_v51 = vpop.eup %3163  ;;  %3024 = vmatpush3.msra.mxu0 %v2262_v50  ;;  %3025 = vmatprep.mubr.msk.f32.mxu0 %vm3234_vm1, %v3233_v8 }
 0xed3   : > { %v2032_v52 = vmul.f32 %v3164_v51, %v3156_v35  ;;  %3036 = vmatprep.subr.bf16.mxu0 %v3233_v8  ;;  %3029 = vmatpush3.bf16.msra.mxu1 %v3117_v18 }
 0xed4   : > { %3030 = vmatprep.subr.bf16.mxu1 %v3233_v8 }
 0xed5   : > { %3026 = vmatmul.mubr.msk.f32.vlgmr.msra.gmra.mxu0 %vm649_vm3, %v2032_v52 }
 0xed6   : > { %3040 = vmatprep.mubr.msk.bf16.mxu0 %vm3234_vm1, %v3233_v8  ;;  %3037 = vmatpush3.bf16.msra.mxu0 %v3119_v17 }
 0xed7   : > { %3031 = vmatpush3.bf16.msra.mxu1 %v3118_v55  ;;  %3038 = vmatprep.subr.bf16.mxu0 %v3233_v8 }
 0xed8   : > { %3044 = vmatprep.subr.bf16.mxu1 %v3233_v8 }
 0xf28   : > { %v2105_v53 = vpop.f32.mrf.mxu1 }
 0xf29   : > { %2337 = vst.msk [vmem:[#allocation3] sm:$0xff] %vm649_vm3, %v2105_v53 }
 0xf2a   : > { %v3012_v54 = vpop.f32.mrf.mxu1 }
 0xf90   : > { %v2257_v56 = vpop.f32.mrf.mxu1 }
 0xf91   : > { %v2181_v57 = vpop.f32.mrf.mxu0  ;;  %2344 = vrot.lane.b32.xlu1 %v2257_v56, %s3810_s18  ;;  %s2673_s18 = sshll.u32 %s522_s19, 4  ;;  %s2674_s18 = int_to_ptr.vmem [resolvable:$true] %s2673_s18 }
 0xf92   : > { %2339 = vrot.lane.b32.xlu0 %v2181_v57, %s3811_s28  ;;  %v3022_v58 = vpop.f32.mrf.mxu1  ;;  %s3171_s1 = scalar_lea.vmem %s2674_s18, 16  ;;  %p3178_p0 = scmp.lt.s32.totalorder %s2674_s18, %s3176_s3 }
 0xf93   : > { %v3017_v59 = vpop.f32.mrf.mxu0  ;;  %p3172_p11 = scmp.ne.s32.totalorder %s2674_s18, %s3171_s1  ;;  %p3179_p1 = scmp.lt.s32.totalorder %s3177_s25, %s3171_s1 }
 0xf95   : > { %v2333_v60 = vpop.f32.mrf.mxu0  ;;  %p3173_p12 = pnand %p3172_p11, %p3367_p5  ;;  %p3180_p2 = por %p3179_p1, %p3178_p0 }
 0xf96   : > { %2349 = vrot.lane.b32.xlu0 %v2333_v60, %s3812_s29 }
 0xf97   : > { %v3027_v61 = vpop.f32.mrf.mxu0  ;;  %p3174_p13 = pneg %p3173_p12 }
 0xf99   : > { %p3181_p3 = pnand %p3180_p2, %p3174_p13 }
0x1003   : > { %v2345_v62 = vpop.permute.xlu1 %2344 }
0x1004   : > { %v2340_v63 = vpop.permute.xlu0 %2339 }
0x1005   : > { %2342 = vst.msk [vmem:[#allocation3] sm:$0xff] %vm1305_vm4, %v2340_v63 }
0x1006   : > { %2347 = vst.msk [vmem:[#allocation3] sm:$0xff] %vm1311_vm5, %v2345_v62 }
0x1008   : > { %v2350_v0 = vpop.permute.xlu0 %2349 }
0x1009   : > { %2352 = vst.msk [vmem:[#allocation3] sm:$0xff] %vm1317_vm6, %v2350_v0 }
0x1010   : > { %v2353_v1 = vld [vmem:[#allocation3] sm:$0xff] }
0x1011   : > { %v2354_v2 = vpack.c.bf16 %v2353_v1, %v2353_v1  ;;  %v2839_v1 = vld [vmem:[%s3777_s14 + $0x1] ss:$0 sm:$0xff] }
0x1013   : > { %3033 = vmatmul.mubr.msk.bf16.vlgmr.msra.gmra.mxu1 %vm534_vm0, %v2354_v2 }
0x1014   : > { %3052 = vmatprep.mubr.msk.bf16.mxu1 %vm3234_vm1, %v3233_v8  ;;  %3045 = vmatpush3.bf16.msra.mxu1 %v3121_v28 }
0x1015   : > { %3046 = vmatprep.subr.bf16.mxu1 %v3233_v8 }
0x1018   : > { %3047 = vmatpush3.bf16.msra.mxu1 %v3122_v29 }
0x1019   : > { %3048 = vmatprep.subr.bf16.mxu1 %v3233_v8 }
0x101c   : > { %3049 = vmatpush3.bf16.msra.mxu1 %v3123_v30 }
0x101d   : > { %3050 = vmatprep.subr.bf16.mxu1 %v3233_v8 }
0x1020   : > { %3051 = vmatpush3.bf16.msra.mxu1 %v3124_v31 }
0x10d3   : > { %v2417_v4 = vpop.f32.mrf.mxu1 }
0x10d4   : > { %v2418_v5 = vadd.f32 %v2805_v3, %v2417_v4  ;;  %v2840_v3 = vld [vmem:[%s3778_s15 + $0x1] ss:$0 sm:$0xff] }
0x10d5   : > { %v3034_v6 = vpop.f32.mrf.mxu1 }
0x10d6   : > { %v2423_v7 = vadd.f32 %v2418_v5, %v3575_v47  ;;  %v3120_v47 = vld [vmem:[%s3773_s10 + $0x10] sm:$0xff]  }
0x10d7   : > { %v2420_v9 = vpop.f32.mrf.mxu1  ;;  %3039 = vmatpush3.bf16.msra.mxu0 %v3120_v47 }
0x10d8   : > { %v2428_v10 = vsel %vm534_vm0, %v2423_v7, 0.0 }
0x10d9   : > { %2429 = vadd.xlane.f32.xlu1 %v2428_v10  ;;  %v3035_v11 = vpop.f32.mrf.mxu1 }
0x1162   : > { %v2430_v12 = vpop.xlane.xlu1 %2429 }
0x1163   : > { %v2431_v13 = vmul.f32 0.03125, %v2430_v12 }
0x1165   : > { %v2432_v14 = vsub.f32 %v2423_v7, %v2431_v13 }
0x1167   : > { %v2433_v15 = vmul.f32 %v2432_v14, %v2432_v14 }
0x1169   : > { %v2434_v16 = vsel %vm534_vm0, %v2433_v15, 0.0 }
0x116a   : > { %2435 = vadd.xlane.f32.xlu0 %v2434_v16 }
0x11f3   : > { %v2436_v19 = vpop.xlane.xlu0 %2435 }
0x11f4   : > { %v2437_v20 = vmul.f32 0.03125, %v2436_v19 }
0x11f6   : > { %v2438_v21 = vadd.f32 1e-05, %v2437_v20 }
0x11f8   : > { %3165 = vrsqrt.f32 %v2438_v21 }
0x1205   : > { %v3166_v22 = vpop.eup %3165 }
0x1206   : > { %v2440_v24 = vmul.f32 %v3166_v22, %v2432_v14 }
0x1208   : > { %v2447_v34 = vmul.f32 %v2811_v23, %v2440_v24 }
0x120a   : > { %v2454_v26 = vadd.f32 %v2812_v25, %v2447_v34 }
0x120c   : > { %v2455_v27 = vpack.c.bf16 %v2454_v26, %v2454_v26 }
0x120e   : > { %3041 = vmatmul.mubr.msk.bf16.vlgmr.msra.gmra.mxu0 %vm534_vm0, %v2455_v27 }
0x12ce   : > { %v2518_v33 = vpop.f32.mrf.mxu0 }
0x12cf   : > { %v2519_v35 = vadd.f32 %v2818_v32, %v2518_v33 }
0x12d0   : > { %v3042_v36 = vpop.f32.mrf.mxu0 }
0x12d1   : > { %v2525_v37 = vmul.f32 0.044715, %v2519_v35  ;;  %v2524_v45 = vmul.f32 0.5, %v2519_v35 }
0x12d2   : > { %v2521_v38 = vpop.f32.mrf.mxu0 }
0x12d3   : > { %v2526_v39 = vmul.f32 %v2525_v37, %v2519_v35 }
0x12d4   : > { %v3043_v40 = vpop.f32.mrf.mxu0 }
0x12d5   : > { %v2527_v41 = vmul.f32 %v2526_v39, %v2519_v35 }
0x12d7   : > { %v2528_v42 = vadd.f32 %v2527_v41, %v2519_v35 }
0x12d9   : > { %v2529_v43 = vmul.f32 0.7978846, %v2528_v42 }
0x12db   : > { %3167 = vtanh.f32 %v2529_v43 }
0x12e8   : > { %v3168_v44 = vpop.eup %3167 }
0x12e9   : > { %v2531_v46 = vadd.f32 1.0, %v3168_v44 }
0x12eb   : > { %v2532_v8 = vmul.f32 %v2531_v46, %v2524_v45 }
0x12ed   : > { %v2533_v48 = vpack.c.bf16 %v2532_v8, %v2532_v8 }
0x12ef   : > { %3053 = vmatmul.mubr.msk.bf16.vlgmr.msra.gmra.mxu1 %vm1533_vm7, %v2533_v48 }
0x13af   : > { %v2612_v50 = vpop.f32.mrf.mxu1 }
0x13b0   : > { %v2613_v51 = vadd.f32 %v2831_v49, %v2612_v50 }
0x13b1   : > { %v3054_v52 = vpop.f32.mrf.mxu1 }
0x13b2   : > { %v2618_v53 = vadd.f32 %v2613_v51, %v2454_v26 }
0x13b3   : > { %v2615_v54 = vpop.f32.mrf.mxu1 }
0x13b4   : > { %v2623_v18 = vsel %vm534_vm0, %v2618_v53, 0.0 }
0x13b5   : > { %2624 = vadd.xlane.f32.xlu0 %v2623_v18  ;;  %v3055_v55 = vpop.f32.mrf.mxu1 }
0x143e   : > { %v2625_v56 = vpop.xlane.xlu0 %2624 }
0x143f   : > { %v2626_v57 = vmul.f32 0.03125, %v2625_v56 }
0x1441   : > { %v2627_v58 = vsub.f32 %v2618_v53, %v2626_v57 }
0x1443   : > { %v2628_v59 = vmul.f32 %v2627_v58, %v2627_v58 }
0x1445   : > { %v2629_v60 = vsel %vm534_vm0, %v2628_v59, 0.0 }
0x1446   : > { %2630 = vadd.xlane.f32.xlu1 %v2629_v60 }
0x14cf   : > { %v2631_v61 = vpop.xlane.xlu1 %2630 }
0x14d0   : > { %v2632_v62 = vmul.f32 0.03125, %v2631_v61 }
0x14d2   : > { %v2633_v63 = vadd.f32 1e-05, %v2632_v62 }
0x14d4   : > { %3169 = vrsqrt.f32 %v2633_v63 }
0x14e1   : > { %v3170_v0 = vpop.eup %3169 }
0x14e2   : > { %v2635_v2 = vmul.f32 %v3170_v0, %v2627_v58 }
0x14e4   : > { %v2642_v4 = vmul.f32 %v2839_v1, %v2635_v2 }
0x14e6   : > { %v2649_v5 = vadd.f32 %v2840_v3, %v2642_v4 }
0x14e8   : > { %v2650_v6 = vsel %vm534_vm0, %v2649_v5, 0.0 }
0x14e9   : > { %v2651_v7 = vrot.slane %v2650_v6, 4 }
0x14eb   : > { %v2652_v9 = vadd.f32 %v2651_v7, %v2650_v6 }
0x14ed   : > { %v2653_v10 = vrot.slane %v2652_v9, 2 }
0x14ef   : > { %v2654_v11 = vadd.f32 %v2653_v10, %v2652_v9 }
0x14f1   : > { %v2655_v12 = vrot.slane %v2654_v11, 1 }
0x14f3   : > { %v2656_v13 = vadd.f32 %v2655_v12, %v2654_v11 }
0x14f5   : > { %v2657_v14 = vmul.f32 0.125, %v2656_v13 }
0x14f7   : > { %2659 = vst.msk [vmem:[%s522_s19] sm:$0x1] %vm2658_vm8, %v2657_v14 }
0x14f8   : > { %3184 = shalt.err (!%p3181_p3)
}
0x14f9   : > { %s3185_s4 = scalar_lea.hbm %s2671_s23, 16  ;;  %s3189_s19 = scalar_lea.hbm %s3779_s16, 32 }
0x14fa   : > { %p3186_p4 = scmp.ne.s32.totalorder %s2671_s23, %s3185_s4  ;;  %p3190_p9 = scmp.lt.s32.totalorder %s2671_s23, %s3779_s16 }
0x14fb   : > { %p3191_p10 = scmp.lt.s32.totalorder %s3189_s19, %s3185_s4 }
0x14fc   : > { %p3187_p7 = pnand %p3186_p4, %p3367_p5 }
0x14fd   : > { %p3192_p11 = por %p3191_p10, %p3190_p9 }
0x14fe   : > { %p3188_p8 = pneg %p3187_p7 }
0x1500   : > { %p3193_p12 = pnand %p3192_p11, %p3188_p8 }
0x1502   : > { %3196 = shalt.err (!%p3193_p12)
}
0x1503   : > { %3056 = dma.vmem_to_hbm [thread:$0]  (%p3367_p5), %s2674_s18, 16, %s2671_s23, %s2661_s30  }
0x1504 PF: > { %p3062_p13 = scmp.ge.s32.totalorder %s3231_s24, 2  ;;  %s2685_s1 = sand.u32 1, %s3219_s21  }
0x1505   : > { %s2686_s2 = scalar_lea.sflag [#allocation5], %s2685_s1 }
0x1506   : > { %p3059_p0 = pnand %p3062_p13, %p3371_p6 }
0x1508   : > { %p3060_p1 = pneg %p3059_p0 }
0x150a   : > { %3214 = dma.done.wait (%p3060_p1), %s2686_s2, 16  }
0x150b   : > { %3216 = vsyncadd (%p3060_p1), %s2686_s2, 4294967280  ;;  %s3813_s3 = sld [smem:[#allocation7_spill]]  ;;  %p26_p2 = scmp.ge.s32.totalorder %s3354_s27, 4  }
0x150c   : > { %s3814_s23 = sld [smem:[#allocation8_spill]]  ;;  %s3815_s21 = smov %s3223_s22 }
0x150d   : > { %s3817_s24 = smov %s3354_s27  ;;  %28 = sbr.rel (!%p26_p2) target bundleno = 9 (0x9), region = 134 }
0x1511   : > { %s3816_s22 = smov %s3813_s3 }
0x1512   :  { %2690 = vsyncpa [#allocation5], 1 }
0x1513   :  { %2692 = vsyncpa [#allocation5 + $0x1], 1 }

</bundles_post_ra>
